<compile_context>
chip_gen: v7x
topology: tpu7x:2x2x1
jax: 0.10.0
libtpu: 0.0.40
codegen_flags: <defaults>
</compile_context>

<pallas_src>
import functools

import jax
import jax.numpy as jnp
from jax.experimental import pallas as pl
from jax.experimental.pallas import tpu as pltpu


# ----------------------------------------------------------------------------
# Pallas kernel: fused im2col + (patches @ weight) + bias + PReLU for one band
# ----------------------------------------------------------------------------
def _make_conv_prelu_kernel(TH, W):
    Wp2 = W + 2
    Mout = TH * Wp2
    taps = [(kh, kw) for kh in range(3) for kw in range(3)]

    def kernel(x_ref, w_ref, b_ref, a_ref, o_ref):
        # x_ref: ((TH+3)*(W+2), C) bf16  -- flat padded band (row stride = W+2, +1 slack row)
        # w_ref: (9*C, Cout)       bf16  -- conv weight, K ordered (kh, kw, c)
        # b_ref: (1, Cout)         f32   -- bias
        # a_ref: (1, Cout)         f32   -- PReLU scalar broadcast over Cout
        # o_ref: (TH*(W+2), Cout)  f32   -- flat output rows (2 garbage cols per row, dropped later)
        cols = []
        for kh, kw in taps:
            off = kh * Wp2 + kw                     # static offset -> contiguous row slice
            cols.append(x_ref[off:off + Mout, :])   # (Mout, C) bf16
        slab = jnp.concatenate(cols, axis=-1)       # (Mout, 9*C) bf16 im2col slab (VMEM only)
        acc = jnp.dot(slab, w_ref[...], preferred_element_type=jnp.float32)  # (Mout, Cout) f32
        acc = acc + b_ref[...]
        o_ref[...] = jnp.where(acc >= 0, acc, a_ref[...] * acc).astype(o_ref.dtype)

    return kernel


def _conv_prelu_bands(xb, w2d, b2d, a2d, TH, W):
    # xb:  (N, nbands, (TH+3)*(W+2), C) bf16
    # w2d: (9*C, Cout) bf16   b2d/a2d: (1, Cout) f32
    N, nbands, L, C = xb.shape
    K, Cout = w2d.shape
    Mout = TH * (W + 2)

    grid_spec = pltpu.PrefetchScalarGridSpec(
        num_scalar_prefetch=0,
        grid=(N, nbands),
        in_specs=[
            # one flat padded band per grid step (leading size-1 dims squeezed away)
            pl.BlockSpec((None, None, L, C), lambda n, i: (n, i, 0, 0)),
            # weight / bias / alpha are resident (constant index map)
            pl.BlockSpec((K, Cout), lambda n, i: (0, 0)),
            pl.BlockSpec((1, Cout), lambda n, i: (0, 0)),
            pl.BlockSpec((1, Cout), lambda n, i: (0, 0)),
        ],
        out_specs=pl.BlockSpec((None, None, Mout, Cout), lambda n, i: (n, i, 0, 0)),
    )
    return pl.pallas_call(
        _make_conv_prelu_kernel(TH, W),
        out_shape=jax.ShapeDtypeStruct((N, nbands, Mout, Cout), jnp.float32),
        grid_spec=grid_spec,
        compiler_params=pltpu.CompilerParams(
            dimension_semantics=("parallel", "parallel"),
        ),
    )(xb, w2d, b2d, a2d)


# ----------------------------------------------------------------------------
# Wrapper: cheap input-sized layout prep + kernel + single output transpose
# ----------------------------------------------------------------------------
def _pick_band_rows(H, W, target_rows=1024):
    # band height TH: aim for ~1024 output rows per tile (row length is W+2)
    return max(1, min(H, -(-target_rows // (W + 2))))


def upsample_block(x, weight, bias, alpha, up_scale):
    """Forward of UpsampleBlock.

    x:      (N, Cin, H, W)          float32, NCHW (PyTorch convention)
    weight: (Cin*r*r, Cin, 3, 3)    PyTorch OIHW conv weight
    bias:   (Cin*r*r,)
    alpha:  scalar PReLU parameter (nn.PReLU() default: one shared scalar)
    returns (N, Cin, H*r, W*r)      float32, NCHW
    """
    N, Cin, H, W = x.shape
    r = up_scale
    Cout = Cin * r * r
    K = 9 * Cin
    Wp2 = W + 2

    TH = _pick_band_rows(H, W)
    nbands = -(-H // TH)
    H_pad = nbands * TH
    L = (TH + 3) * Wp2
    Mout = TH * Wp2

    # NCHW -> NHWC (bf16); pad 1-px conv halo, pad H up to H_pad, plus 2 extra bottom rows
    # (1 halo + 1 slack row so the flat-index tap reads of the last band stay in bounds).
    x_nhwc = jnp.transpose(x, (0, 2, 3, 1)).astype(jnp.bfloat16)          # (N, H, W, C)
    xp = jnp.pad(x_nhwc, ((0, 0), (1, H_pad - H + 3), (1, 1), (0, 0)))    # (N, H_pad+4, W+2, C)
    # Overlapping row bands (each carries its halo + slack row), spatially flattened so the
    # kernel sees a 2-D matrix whose row stride is W+2.
    xb = jnp.stack([xp[:, i * TH:i * TH + TH + 3] for i in range(nbands)], axis=1)
    xb = xb.reshape(N, nbands, L, Cin)                                    # (N, nb, L, C)

    # Conv weight with K ordered (kh, kw, c) to match the in-kernel slab layout.
    w2d = jnp.transpose(weight, (2, 3, 1, 0)).reshape(K, Cout).astype(jnp.bfloat16)
    b2d = bias.reshape(1, Cout).astype(jnp.float32)
    a2d = jnp.broadcast_to(jnp.asarray(alpha, jnp.float32).reshape(1, 1), (1, Cout))

    y = _conv_prelu_bands(xb, w2d, b2d, a2d, TH, W)        # (N, nbands, Mout, Cout) f32

    # Drop the 2 garbage columns per row and the padded rows, then fold PixelShuffle +
    # NCHW conversion into ONE transpose of the output-sized array.
    y = y.reshape(N, nbands, TH, Wp2, Cout)[:, :, :, :W, :]   # (N, nb, TH, W, Cout)
    y = y.reshape(N, H_pad, W, Cout)[:, :H]                   # (N, H, W, Cout)
    y = y.reshape(N, H, W, Cin, r, r)                         # (N, H, W, C, rh, rw)
    y = jnp.transpose(y, (0, 3, 1, 4, 2, 5))                  # (N, C, H, rh, W, rw)
    return y.reshape(N, Cin, H * r, W * r)


# ----------------------------------------------------------------------------
# Pure-JAX reference (sanity check)
# ----------------------------------------------------------------------------
def upsample_block_ref(x, weight, bias, alpha, up_scale):
    y = jax.lax.conv_general_dilated(
        x, weight, window_strides=(1, 1), padding="SAME",
        dimension_numbers=("NCHW", "OIHW", "NCHW"),
        precision=jax.lax.Precision.HIGHEST)
    y = y + bias[None, :, None, None]
    N, Crr, H, W = y.shape
    r = up_scale
    C = Crr // (r * r)
    y = y.reshape(N, C, r, r, H, W)
    y = jnp.transpose(y, (0, 1, 4, 2, 5, 3)).reshape(N, C, H * r, W * r)
    return jnp.where(y >= 0, y, alpha * y)


if __name__ == "__main__":
    key = jax.random.PRNGKey(0)
    N, Cin, H, W = 2, 4, 16, 16
    up_scale = 2
    Cout = Cin * up_scale ** 2

    kx, kw_, kb = jax.random.split(key, 3)
    x = jax.random.normal(kx, (N, Cin, H, W), jnp.float32)
    weight = jax.random.normal(kw_, (Cout, Cin, 3, 3), jnp.float32) * 0.1
    bias = jax.random.normal(kb, (Cout,), jnp.float32) * 0.1
    alpha = jnp.float32(0.25)  # nn.PReLU() default init

    fwd = jax.jit(functools.partial(upsample_block, up_scale=up_scale))
    out = jax.block_until_ready(fwd(x, weight, bias, alpha))

    # Reference computed on bf16-rounded matmul operands (the kernel casts x/weight to bf16).
    xq = x.astype(jnp.bfloat16).astype(jnp.float32)
    wq = weight.astype(jnp.bfloat16).astype(jnp.float32)
    ref = upsample_block_ref(xq, wq, bias, alpha, up_scale)

    assert out.shape == (N, Cin, H * up_scale, W * up_scale), out.shape
    err = float(jnp.max(jnp.abs(out - ref)))
    assert jnp.allclose(out, ref, atol=1e-2, rtol=1e-2), err

    print("KERNEL_OK")
</pallas_src>

<mosaic_0001>
module attributes {stable_mosaic.version = 11 : i64} {
  func.func @kernel(%arg0: i32, %arg1: i32, %arg2: memref<1x1x342x4xbf16, #tpu.memory_space<vmem>>, %arg3: memref<36x16xbf16, #tpu.memory_space<vmem>>, %arg4: memref<1x16xf32, #tpu.memory_space<vmem>>, %arg5: memref<1x16xf32, #tpu.memory_space<vmem>>, %arg6: memref<1x1x288x16xf32, #tpu.memory_space<vmem>>) attributes {dimension_semantics = [#tpu.dimension_semantics<parallel>, #tpu.dimension_semantics<parallel>], iteration_bounds = array<i64: 2, 1>, scalar_prefetch = 0 : i64, scratch_operands = 0 : i64, tpu.core_type = #tpu.core_type<tc>, window_params = [{transform_indices = @transform_0, window_bounds = array<i64: 1, 1, 342, 4>}, {pipeline_mode = #tpu.pipeline_mode<synchronous>, transform_indices = @transform_1, window_bounds = array<i64: 36, 16>}, {pipeline_mode = #tpu.pipeline_mode<synchronous>, transform_indices = @transform_2, window_bounds = array<i64: 1, 16>}, {pipeline_mode = #tpu.pipeline_mode<synchronous>, transform_indices = @transform_3, window_bounds = array<i64: 1, 16>}, {transform_indices = @transform_4, window_bounds = array<i64: 1, 1, 288, 16>}]} {
    %c0 = arith.constant 0 : index
    %c0_0 = arith.constant 0 : index
    %c0_1 = arith.constant 0 : index
    %c0_2 = arith.constant 0 : index
    %0 = vector.load %arg2[%c0, %c0_0, %c0_1, %c0_2] : memref<1x1x342x4xbf16, #tpu.memory_space<vmem>>, vector<1x1x288x4xbf16>
    %1 = vector.shape_cast %0 : vector<1x1x288x4xbf16> to vector<288x4xbf16>
    %c0_3 = arith.constant 0 : index
    %c0_4 = arith.constant 0 : index
    %c1 = arith.constant 1 : index
    %c0_5 = arith.constant 0 : index
    %2 = vector.load %arg2[%c0_3, %c0_4, %c1, %c0_5] : memref<1x1x342x4xbf16, #tpu.memory_space<vmem>>, vector<1x1x288x4xbf16>
    %3 = vector.shape_cast %2 : vector<1x1x288x4xbf16> to vector<288x4xbf16>
    %c0_6 = arith.constant 0 : index
    %c0_7 = arith.constant 0 : index
    %c2 = arith.constant 2 : index
    %c0_8 = arith.constant 0 : index
    %4 = vector.load %arg2[%c0_6, %c0_7, %c2, %c0_8] : memref<1x1x342x4xbf16, #tpu.memory_space<vmem>>, vector<1x1x288x4xbf16>
    %5 = vector.shape_cast %4 : vector<1x1x288x4xbf16> to vector<288x4xbf16>
    %c0_9 = arith.constant 0 : index
    %c0_10 = arith.constant 0 : index
    %c18 = arith.constant 18 : index
    %c0_11 = arith.constant 0 : index
    %6 = vector.load %arg2[%c0_9, %c0_10, %c18, %c0_11] : memref<1x1x342x4xbf16, #tpu.memory_space<vmem>>, vector<1x1x288x4xbf16>
    %7 = vector.shape_cast %6 : vector<1x1x288x4xbf16> to vector<288x4xbf16>
    %c0_12 = arith.constant 0 : index
    %c0_13 = arith.constant 0 : index
    %c19 = arith.constant 19 : index
    %c0_14 = arith.constant 0 : index
    %8 = vector.load %arg2[%c0_12, %c0_13, %c19, %c0_14] : memref<1x1x342x4xbf16, #tpu.memory_space<vmem>>, vector<1x1x288x4xbf16>
    %9 = vector.shape_cast %8 : vector<1x1x288x4xbf16> to vector<288x4xbf16>
    %c0_15 = arith.constant 0 : index
    %c0_16 = arith.constant 0 : index
    %c20 = arith.constant 20 : index
    %c0_17 = arith.constant 0 : index
    %10 = vector.load %arg2[%c0_15, %c0_16, %c20, %c0_17] : memref<1x1x342x4xbf16, #tpu.memory_space<vmem>>, vector<1x1x288x4xbf16>
    %11 = vector.shape_cast %10 : vector<1x1x288x4xbf16> to vector<288x4xbf16>
    %c0_18 = arith.constant 0 : index
    %c0_19 = arith.constant 0 : index
    %c36 = arith.constant 36 : index
    %c0_20 = arith.constant 0 : index
    %12 = vector.load %arg2[%c0_18, %c0_19, %c36, %c0_20] : memref<1x1x342x4xbf16, #tpu.memory_space<vmem>>, vector<1x1x288x4xbf16>
    %13 = vector.shape_cast %12 : vector<1x1x288x4xbf16> to vector<288x4xbf16>
    %c0_21 = arith.constant 0 : index
    %c0_22 = arith.constant 0 : index
    %c37 = arith.constant 37 : index
    %c0_23 = arith.constant 0 : index
    %14 = vector.load %arg2[%c0_21, %c0_22, %c37, %c0_23] : memref<1x1x342x4xbf16, #tpu.memory_space<vmem>>, vector<1x1x288x4xbf16>
    %15 = vector.shape_cast %14 : vector<1x1x288x4xbf16> to vector<288x4xbf16>
    %c0_24 = arith.constant 0 : index
    %c0_25 = arith.constant 0 : index
    %c38 = arith.constant 38 : index
    %c0_26 = arith.constant 0 : index
    %16 = vector.load %arg2[%c0_24, %c0_25, %c38, %c0_26] : memref<1x1x342x4xbf16, #tpu.memory_space<vmem>>, vector<1x1x288x4xbf16>
    %17 = vector.shape_cast %16 : vector<1x1x288x4xbf16> to vector<288x4xbf16>
    %18 = tpu.concatenate %1, %3, %5, %7, %9, %11, %13, %15, %17 in 1 : vector<288x4xbf16>, vector<288x4xbf16>, vector<288x4xbf16>, vector<288x4xbf16>, vector<288x4xbf16>, vector<288x4xbf16>, vector<288x4xbf16>, vector<288x4xbf16>, vector<288x4xbf16> -> vector<288x36xbf16>
    %c0_27 = arith.constant 0 : index
    %c0_28 = arith.constant 0 : index
    %19 = vector.load %arg3[%c0_27, %c0_28] : memref<36x16xbf16, #tpu.memory_space<vmem>>, vector<36x16xbf16>
    %cst = arith.constant dense<0.000000e+00> : vector<288x16xf32>
    %20 = tpu.matmul %18, %19, %cst {dimension_numbers = #tpu.dot_dimension_numbers<[1], [0], [0], [1], [0, 0, 1, 1], [], []>} : vector<288x36xbf16>, vector<36x16xbf16>, vector<288x16xf32> -> vector<288x16xf32>
    %c0_29 = arith.constant 0 : index
    %c0_30 = arith.constant 0 : index
    %21 = vector.load %arg4[%c0_29, %c0_30] : memref<1x16xf32, #tpu.memory_space<vmem>>, vector<1x16xf32>
    %22 = vector.broadcast %21 : vector<1x16xf32> to vector<288x16xf32>
    %23 = arith.addf %20, %22 : vector<288x16xf32>
    %cst_31 = arith.constant 0.000000e+00 : f32
    %24 = vector.broadcast %cst_31 : f32 to vector<288x16xf32>
    %25 = arith.cmpf oge, %23, %24 : vector<288x16xf32>
    %c0_32 = arith.constant 0 : index
    %c0_33 = arith.constant 0 : index
    %26 = vector.load %arg5[%c0_32, %c0_33] : memref<1x16xf32, #tpu.memory_space<vmem>>, vector<1x16xf32>
    %27 = vector.broadcast %26 : vector<1x16xf32> to vector<288x16xf32>
    %28 = arith.mulf %27, %23 : vector<288x16xf32>
    %29 = arith.select %25, %23, %28 : vector<288x16xi1>, vector<288x16xf32>
    %c0_34 = arith.constant 0 : index
    %c0_35 = arith.constant 0 : index
    %c0_36 = arith.constant 0 : index
    %c0_37 = arith.constant 0 : index
    %30 = vector.load %arg6[%c0_34, %c0_35, %c0_36, %c0_37] : memref<1x1x288x16xf32, #tpu.memory_space<vmem>>, vector<1x1x288x16xf32>
    %31 = vector.shape_cast %30 : vector<1x1x288x16xf32> to vector<288x16xf32>
    %32 = vector.shape_cast %29 : vector<288x16xf32> to vector<1x1x288x16xf32>
    tpu.vector_store %arg6[%c0_34, %c0_35, %c0_36, %c0_37], %32 {strides = array<i32>} : memref<1x1x288x16xf32, #tpu.memory_space<vmem>>, vector<1x1x288x16xf32>,
    return
  }
  func.func @transform_0(%arg0: i32, %arg1: i32) -> (i32, i32, i32, i32) {
    %c0_i32 = arith.constant 0 : i32
    %c0_i32_0 = arith.constant 0 : i32
    %c0_i32_1 = arith.constant 0 : i32
    return %arg0, %arg1, %c0_i32, %c0_i32_0 : i32, i32, i32, i32
  }
  func.func @transform_1(%arg0: i32, %arg1: i32) -> (i32, i32) {
    %c0_i32 = arith.constant 0 : i32
    %c0_i32_0 = arith.constant 0 : i32
    %c0_i32_1 = arith.constant 0 : i32
    return %c0_i32, %c0_i32_0 : i32, i32
  }
  func.func @transform_2(%arg0: i32, %arg1: i32) -> (i32, i32) {
    %c0_i32 = arith.constant 0 : i32
    %c0_i32_0 = arith.constant 0 : i32
    %c0_i32_1 = arith.constant 0 : i32
    return %c0_i32, %c0_i32_0 : i32, i32
  }
  func.func @transform_3(%arg0: i32, %arg1: i32) -> (i32, i32) {
    %c0_i32 = arith.constant 0 : i32
    %c0_i32_0 = arith.constant 0 : i32
    %c0_i32_1 = arith.constant 0 : i32
    return %c0_i32, %c0_i32_0 : i32, i32
  }
  func.func @transform_4(%arg0: i32, %arg1: i32) -> (i32, i32, i32, i32) {
    %c0_i32 = arith.constant 0 : i32
    %c0_i32_0 = arith.constant 0 : i32
    %c0_i32_1 = arith.constant 0 : i32
    return %arg0, %arg1, %c0_i32, %c0_i32_0 : i32, i32, i32, i32
  }
}

</mosaic_0001>

<bundles_post_ra>
// kernel: upsample_block.1
= control target key start
LH: loop header
LB: loop body
LE: loop exit
PB: predicated region body
PF: predicated region fallthrough
CT: control target
= control target key end

     0   :  { %s2214_s15 = smov 0   ;;  %s2216_s16 = smov 0   ;;  %s3608_s0 = inlined_call_operand.vmem [shape: bf16[2,1,342,4], index: 0, kind: input, shape index: {}]   ;;  %s3609_s1 = inlined_call_operand.vmem [shape: bf16[36,16], index: 1, kind: input, shape index: {}]   ;;  %s3610_s2 = inlined_call_operand.vmem [shape: f32[1,16], index: 2, kind: input, shape index: {}]   ;;  %s3611_s3 = inlined_call_operand.vmem [shape: f32[1,16], index: 3, kind: input, shape index: {}]   ;;  %s3612_s4 = inlined_call_operand.vmem [shape: f32[2,1,288,16], index: 4, kind: output, shape index: {}]  }
   0x1   :  { %s2218_s17 = smov 0  }
   0x2 LB: > { %s26_s18 = sadd.s32 1, %s2175_s16  ;;  %p1948_p0 = scmp.ge.s32.totalorder %s2179_s17, 1  ;;  %s2179_s17 = sphi %s2218_s17, %s14_s17   ;;  %s2175_s16 = sphi %s2216_s16, %s3681_s16   ;;  %s2171_s15 = sphi %s2214_s15, %s3680_s15  }
   0x3   : > { %p28_p1 = scmp.ge.s32.totalorder %s26_s18, 2  ;;  %p182_p2 = scmp.lt.s32.totalorder %s2179_s17, 3 }
   0x5   : > { %s3683_s18 = smov (%p28_p1, %s26_s18), 0  ;;  %p183_p3 = pnand %p1948_p0, %p182_p2 }
   0x7   : > { %186 = sbr.rel (%p183_p3) target bundleno = 651 (0x28b), region = 36 }
   0xe   : > { %p216_p4 = scmp.lt.s32.totalorder %s2171_s15, 1  ;;  %vm566_vm0 = vcmask 1046528   ;;  %vm826_vm1 = vcmask 1045504   ;;  %vm378_vm2 = vsmask.f32 7424  ;;  %s2181_s23 = smov 12  }
   0xf   : > { %s2182_s24 = smov 8   ;;  %s2183_s25 = smov 20   ;;  %vm696_vm3 = vsmask.f32 6400  ;;  %vm956_vm4 = vsmask.f32 5376 }
  0x10   : > { %s3685_s15 = smov (!%p216_p4, %s2171_s15), 1  ;;  %s2184_s26 = smov 4   ;;  %vm1086_vm5 = vcmask 1044480   ;;  %vm1520_vm6 = vcmask 1041408   ;;  %vm1160_vm7 = vcmask 31744   ;;  %vm1197_vm8 = vcmask 64512  }
  0x11   : > { %s2077_s19 = smul.u32 172, %s3685_s15  ;;  %s2185_s5 = smov 16   ;;  %vm1234_vm9 = vcmask 97280   ;;  %vm1271_vm10 = vcmask 130048   ;;  %vm1308_vm11 = vcmask 162816   ;;  %vm1345_vm12 = vcmask 195584  }
  0x12   : > { %s2186_s6 = smov 24   ;;  %s2187_s7 = smov 28   ;;  %vm1382_vm13 = vcmask 228352   ;;  %vm1419_vm14 = vcmask 261120   ;;  %vm1483_vm15 = vcmask 293888  }
  0x13   : > { %s2238_s22 = scalar_lea.vmem %s3608_s0, %s2077_s19  ;;  %s2188_s8 = smov 32  }
  0x14   : > { %v238_v0 = vld [vmem:[%s2238_s22 + $0xc] sm:$0xf]  ;;  %v239_v1 = vld [vmem:[%s2238_s22 + $0x10] sm:$0xf]  ;;  %v2243_v2 = vld [vmem:[%s2238_s22 + $0x14] sm:$0xf] }
  0x15   : > { %v273_v3 = vld [vmem:[%s2238_s22 + $0x8] sm:$0xe]  ;;  %v2247_v4 = vcombine.low %v239_v1, %v2243_v2  ;;  %v236_v5 = vld [vmem:[%s2238_s22 + $0x4] sm:$0xf]  ;;  %v272_v8 = vld [vmem:[%s2238_s22] sm:$0xe] }
  0x16   : > { %v237_v6 = vld [vmem:[%s2238_s22 + $0x8] sm:$0xf]  ;;  %v1971_v7 = vcombine.low %v273_v3, %v238_v0  ;;  %v235_v10 = vld [vmem:[%s2238_s22] sm:$0xf]  ;;  %v1970_v13 = vcombine.low %v272_v8, %v236_v5  ;;  %v2260_v16 = vld [vmem:[%s2238_s22 + $0x18] sm:$0xff]   ;;  %s2078_s13 = smul.u32 288, %s3685_s15 }
  0x17   : > { %v2252_v9 = vcombine.low %v237_v6, %v238_v0  ;;  %v278_v11 = vld [vmem:[%s2238_s22 + $0x8] sm:$0xc]  ;;  %v570_v12 = vrot.slane %v2247_v4, 1  ;;  %v2257_v14 = vcombine.low %v235_v10, %v236_v5  ;;  %v828_v19 = vrot.slane %v2247_v4, 2  ;;  %v279_v34 = vld [vmem:[%s2238_s22 + $0x10] sm:$0xc] }
  0x18   : > { %v1975_v15 = vcombine.low %v278_v11, %v238_v0  ;;  %v651_v17 = vrot.slane %v1971_v7, 1  ;;  %v567_v21 = vrot.slane %v1970_v13, 1  ;;  %v572_v28 = vrot.slane %v2260_v16, 1  ;;  %v2291_v45 = vld [vmem:[%s2238_s22 + $0x20] sm:$0xff]   ;;  %v284_v1 = vld [vmem:[%s2238_s22 + $0x10] sm:$0x8] }
  0x19   : > { %v568_v18 = vrot.slane %v2252_v9, 1  ;;  %v387_v20 = vshll.u32 %v2252_v9, 16  ;;  %v380_v24 = vshrl.u32 %v2257_v14, 16  ;;  %v382_v25 = vshll.u32 %v2257_v14, 16  ;;  %v2321_v3 = vld [vmem:[%s2238_s22 + $0x50] sm:$0xff]   ;;  %v2130_v5 = vld [vmem:[%s3609_s1] sm:$0xff]  }
  0x1a   : > { %v827_v22 = vrot.slane %v1975_v15, 2  ;;  %v652_v23 = vsel %vm566_vm0, %v651_v17, %v570_v12  ;;  %v391_v31 = vshrl.u32 %v2252_v9, 16  ;;  %v395_v32 = vshll.u32 %v2247_v4, 16  ;;  %v2131_v11 = vld [vmem:[%s3609_s1 + $0x8] sm:$0xff]   ;;  %2027 = vmatprep.subr.bf16.mxu0 %v2130_v5  ;;  %2069 = vmatprep.subr.bf16.mxu1 %v2130_v5 }
  0x1b   : > { %657 = vrot.lane.b32.xlu0 %v652_v23, %s2181_s23  ;;  %v569_v26 = vsel %vm566_vm0, %v567_v21, %v568_v18  ;;  %v389_v29 = vrot.slane %v387_v20, 1  ;;  %v384_v30 = vrot.slane %v382_v25, 1  ;;  %v399_v33 = vshrl.u32 %v2247_v4, 16  ;;  %2028 = vmatpush3.bf16.msra.mxu0 %v2130_v5 }
  0x1c   : > { %v829_v27 = vsel %vm826_vm1, %v827_v22, %v828_v19  ;;  %604 = vrot.lane.b32.xlu1 %v569_v26, %s2182_s24  ;;  %v571_v35 = vsel %vm566_vm0, %v568_v18, %v570_v12  ;;  %v2279_v36 = vshll.u32 %v2260_v16, 16  ;;  %v2282_v37 = vshrl.u32 %v2260_v16, 16  ;;  %2072 = vmatpush3.bf16.msra.mxu1 %v2130_v5  ;;  %v2342_v22 = vld [vmem:[%s2238_s22 + $0x58] sm:$0xff]  }
  0x1d   : > { %v698_v38 = vshrl.u32 %v1971_v7, 16  ;;  %v385_v39 = vor.u32 %v384_v30, %v380_v24  ;;  %v830_v40 = vrot.slane %v2260_v16, 2  ;;  %v393_v41 = vor.u32 %v391_v31, %v389_v29  ;;  %2029 = vmatprep.subr.bf16.mxu0 %v2131_v11  ;;  %2070 = vmatprep.subr.bf16.mxu1 %v2131_v11 }
  0x1e   : > { %v2286_v42 = vrot.slane %v395_v32, 1  ;;  %v705_v43 = vrot.slane %v399_v33, 1  ;;  %v706_v44 = vrot.slane %v395_v32, 2  ;;  %v701_v48 = vshll.u32 %v1971_v7, 16 }
  0x1f   : > { %864 = vrot.lane.b32.xlu0 %v829_v27, %s2183_s25  ;;  %v390_v46 = vsel %vm378_vm2, %v385_v39, %v389_v29  ;;  %v700_v47 = vrot.slane %v698_v38, 1  ;;  %v2298_v49 = vsel %vm566_vm0, %v570_v12, %v572_v28  ;;  %v709_v50 = vrot.slane %v2282_v37, 1  ;;  %2030 = vmatpush3.bf16.msra.mxu0 %v2131_v11  ;;  %v2373_v38 = vld [vmem:[%s2238_s22 + $0x60] sm:$0xff]  }
  0x20   : > { %606 = vrot.lane.b32.xlu1 %v571_v35, %s2182_s24  ;;  %v710_v51 = vrot.slane %v2279_v36, 2  ;;  %v1976_v52 = vcombine.low %v279_v34, %v2243_v2  ;;  %v703_v53 = vrot.slane %v701_v48, 2  ;;  %v398_v54 = vsel %vm378_vm2, %v393_v41, %v2286_v42  ;;  %2073 = vmatpush3.bf16.msra.mxu1 %v2131_v11  ;;  %3642 = vst [vmem:[#allocation3_spill] sm:$0xff] %v2373_v38 }
  0x21   : > { %v707_v55 = vor.u32 %v706_v44, %v705_v43  ;;  %v831_v59 = vsel %vm826_vm1, %v828_v19, %v830_v40  ;;  %v2312_v61 = vshll.u32 %v2291_v45, 16  ;;  %v2315_v62 = vshrl.u32 %v2291_v45, 16 }
  0x22   : > { %v704_v56 = vor.u32 %v703_v53, %v700_v47  ;;  %v958_v57 = vshrl.u32 %v1976_v52, 16  ;;  %v961_v58 = vshll.u32 %v1976_v52, 16  ;;  %v2309_v60 = vor.u32 %v710_v51, %v709_v50 }
  0x23   : > { %527 = vrot.lane.b32.xlu0 %v390_v46, %s2184_s26  ;;  %v911_v63 = vrot.slane %v1976_v52, 2  ;;  %v965_v0 = vrot.slane %v2282_v37, 2  ;;  %v966_v7 = vrot.slane %v2279_v36, 3  ;;  %v832_v13 = vrot.slane %v2291_v45, 2 }
  0x24   : > { %659 = vrot.lane.b32.xlu1 %v2298_v49, %s2181_s23  ;;  %v708_v6 = vsel %vm696_vm3, %v704_v56, %v707_v55  ;;  %v960_v8 = vrot.slane %v958_v57, 2  ;;  %v963_v10 = vrot.slane %v961_v58, 3  ;;  %v712_v12 = vsel %vm696_vm3, %v707_v55, %v2309_v60  ;;  %v2422_v58 = vld [vmem:[%s2238_s22 + $0x68] sm:$0xff]  }
  0x25   : > { %v969_v15 = vrot.slane %v2315_v62, 2  ;;  %v970_v17 = vrot.slane %v2312_v61, 3  ;;  %v912_v18 = vsel %vm826_vm1, %v911_v63, %v830_v40  ;;  %v967_v19 = vor.u32 %v966_v7, %v965_v0 }
  0x26   : > { %v964_v20 = vor.u32 %v963_v10, %v960_v8  ;;  %v1980_v21 = vcombine.low %v284_v1, %v2243_v2  ;;  %v2345_v23 = vshll.u32 %v2321_v3, 16  ;;  %v2350_v24 = vsel %vm826_vm1, %v830_v40, %v832_v13 }
  0x27   : > { %529 = vrot.lane.b32.xlu0 %v398_v54, %s2184_s26  ;;  %v2352_v25 = vor.u32 %v970_v17, %v969_v15  ;;  %v1088_v2 = vrot.slane %v2260_v16, 3  ;;  %v2357_v26 = vshrl.u32 %v2321_v3, 16  ;;  %v2364_v31 = vshll.u32 %v2342_v22, 16 }
  0x28   : > { %866 = vrot.lane.b32.xlu1 %v831_v59, %s2183_s25  ;;  %v968_v27 = vsel %vm956_vm4, %v964_v20, %v967_v19  ;;  %v1087_v29 = vrot.slane %v1980_v21, 3  ;;  %v3616_v30 = vrot.slane %v2345_v23, 1  ;;  %v401_v34 = vor.u32 %v399_v33, %v2286_v42  ;;  %v2425_v59 = vld [vmem:[%s2238_s22 + $0x28] sm:$0xff]  }
  0x29   : > { %3641 = vst [vmem:[#allocation2_spill] sm:$0xff] %v2364_v31  ;;  %v972_v32 = vsel %vm956_vm4, %v967_v19, %v2352_v25  ;;  %v405_v35 = vrot.slane %v2279_v36, 1  ;;  %v469_v41 = vrot.slane %v2364_v31, 1  ;;  %v1090_v36 = vrot.slane %v2291_v45, 3 }
  0x2a   : > { %v1089_v39 = vsel %vm1086_vm5, %v1087_v29, %v1088_v2  ;;  %v465_v40 = vor.u32 %v2357_v26, %v3616_v30  ;;  %v2385_v42 = vshrl.u32 %v2342_v22, 16  ;;  %v2388_v43 = vshll.u32 %v2373_v38, 16 }
  0x2b   : > { %787 = vrot.lane.b32.xlu0 %v708_v6, %s2185_s5  ;;  %v406_v33 = vsel %vm378_vm2, %v401_v34, %v405_v35  ;;  %v409_v46 = vor.u32 %v2282_v37, %v405_v35  ;;  %v413_v47 = vrot.slane %v2312_v61, 1  ;;  %v1091_v48 = vsel %vm1086_vm5, %v1088_v2, %v1090_v36 }
  0x2c   : > { %789 = vrot.lane.b32.xlu1 %v712_v12, %s2185_s5  ;;  %3643 = vst [vmem:[#allocation4_spill] sm:$0xff] %v2385_v42  ;;  %v470_v44 = vsel %vm378_vm2, %v465_v40, %v469_v41  ;;  %v473_v50 = vor.u32 %v2385_v42, %v469_v41  ;;  %v477_v51 = vrot.slane %v2388_v43, 1  ;;  %v3615_v53 = vrot.slane %v2321_v3, 1 }
  0x2d   : > { %v414_v37 = vsel %vm378_vm2, %v409_v46, %v413_v47  ;;  %v588_v54 = vrot.slane %v2342_v22, 1  ;;  %v574_v55 = vrot.slane %v2291_v45, 1  ;;  %v590_v57 = vrot.slane %v2373_v38, 1 }
  0x2e   : > { %v478_v52 = vsel %vm378_vm2, %v473_v50, %v477_v51  ;;  %v2434_v1 = vshrl.u32 %v2373_v38, 16  ;;  %v576_v5 = vrot.slane %v2425_v59, 1  ;;  %v741_v6 = vrot.slane %v2385_v42, 1 }
  0x2f   : > { %917 = vrot.lane.b32.xlu0 %v912_v18, %s2186_s6  ;;  %v2416_v56 = vsel %vm566_vm0, %v3615_v53, %v588_v54  ;;  %v575_v63 = vsel %vm566_vm0, %v572_v28, %v574_v55  ;;  %v591_v0 = vsel %vm566_vm0, %v588_v54, %v590_v57  ;;  %v742_v7 = vrot.slane %v2364_v31, 2  ;;  %v2134_v18 = vld [vmem:[%s3609_s1 + $0x10] ss:$0 sps:$4 sm:$0x33]  }
  0x30   : > { %919 = vrot.lane.b32.xlu1 %v2350_v24, %s2186_s6  ;;  %3644 = vst [vmem:[#allocation5_spill] sm:$0xff] %v2416_v56  ;;  %v713_v16 = vrot.slane %v2315_v62, 1  ;;  %v714_v28 = vrot.slane %v2312_v61, 2  ;;  %v2445_v8 = vshll.u32 %v2425_v59, 16  ;;  %v2448_v10 = vshrl.u32 %v2425_v59, 16  ;;  %2075 = vmatprep.subr.msk.bf16.mxu0 %vm1520_vm6, %v2134_v18 }
  0x31   : > { %v745_v11 = vrot.slane %v2434_v1, 1  ;;  %v746_v12 = vrot.slane %v2388_v43, 2  ;;  %v2453_v15 = vshll.u32 %v2422_v58, 16  ;;  %v2456_v17 = vshrl.u32 %v2422_v58, 16  ;;  %2076 = vmatprep.subr.msk.bf16.mxu1 %vm1520_vm6, %v2134_v18 }
  0x32   : > { %v2470_v20 = vsel %vm566_vm0, %v574_v55, %v576_v5  ;;  %v2473_v21 = vor.u32 %v742_v7, %v741_v6  ;;  %v715_v2 = vor.u32 %v714_v28, %v713_v16  ;;  %v718_v29 = vrot.slane %v2445_v8, 2  ;;  %v2511_v55 = vld [vmem:[%s2238_s22 + $0x70] sm:$0xff]  }
  0x33   : > { %1047 = vrot.lane.b32.xlu0 %v968_v27, %s2187_s7  ;;  %v717_v27 = vrot.slane %v2448_v10, 1  ;;  %v749_v34 = vrot.slane %v2456_v17, 1  ;;  %v750_v35 = vrot.slane %v2453_v15, 2  ;;  %v1522_v41 = vsel %vm1520_vm6, %v2134_v18, 0 }
  0x34   : > { %1049 = vrot.lane.b32.xlu1 %v972_v32, %s2187_s7  ;;  %3645 = vst [vmem:[#allocation6_spill] sm:$0xff] %v2473_v21  ;;  %v747_v32 = vor.u32 %v746_v12, %v745_v11  ;;  %2032 = vmatpush3.bf16.msra.mxu0 %v1522_v41  ;;  %v848_v50 = vrot.slane %v2373_v38, 2  ;;  %v850_v54 = vrot.slane %v2422_v58, 2  ;;  %v852_v6 = vrot.slane %v2511_v55, 2 }
  0x35   : > { %v2485_v40 = vor.u32 %v718_v29, %v717_v27  ;;  %2074 = vmatpush3.bf16.msra.mxu1 %v1522_v41  ;;  %v1002_v16 = vrot.slane %v2388_v43, 3  ;;  %v973_v28 = vrot.slane %v2448_v10, 2  ;;  %v974_v11 = vrot.slane %v2445_v8, 3 }
  0x36   : > { %v1005_v18 = vrot.slane %v2456_v17, 2  ;;  %v2539_v27 = vshll.u32 %v2511_v55, 16  ;;  %v2542_v29 = vshrl.u32 %v2511_v55, 16 }
  0x37   : > { %1124 = vrot.lane.b32.xlu0 %v1089_v39, %s2188_s8  ;;  %v716_v39 = vsel %vm696_vm3, %v2309_v60, %v715_v2  ;;  %v720_v46 = vsel %vm696_vm3, %v715_v2, %v2485_v40  ;;  %v1006_v2 = vrot.slane %v2453_v15, 3 }
  0x38   : > { %531 = vrot.lane.b32.xlu1 %v406_v33, %s2184_s26  ;;  %v748_v33 = vsel %vm696_vm3, %v2473_v21, %v747_v32 }
  0x3b   : > { %547 = vrot.lane.b32.xlu0 %v470_v44, %s2184_s26  ;;  %v2489_v44 = vor.u32 %v750_v35, %v749_v34  ;;  %v975_v35 = vor.u32 %v974_v11, %v973_v28  ;;  %v1108_v11 = vrot.slane %v2422_v58, 3 }
  0x3c   : > { %1126 = vrot.lane.b32.xlu1 %v1091_v48, %s2188_s8  ;;  %v3614_v48 = vrot.slane %v2342_v22, 2 }
  0x3d   : > { %v752_v60 = vsel %vm696_vm3, %v747_v32, %v2489_v44  ;;  %v2548_v32 = vsel %vm826_vm1, %v850_v54, %v852_v6 }
  0x3f   : > { %533 = vrot.lane.b32.xlu0 %v414_v37, %s2184_s26  ;;  %v834_v37 = vrot.slane %v2425_v59, 2 }
  0x40   : > { %549 = vrot.lane.b32.xlu1 %v478_v52, %s2184_s26  ;;  %v2505_v52 = vsel %vm826_vm1, %v3614_v48, %v848_v50 }
  0x41   : > { %3646 = vst [vmem:[#allocation7_spill] sm:$0xff] %v2505_v52 }
  0x43   : > { %608 = vrot.lane.b32.xlu0 %v2298_v49, %s2182_s24  ;;  %v592_v49 = vrot.slane %v2422_v58, 1  ;;  %v753_v58 = vrot.slane %v2542_v29, 1 }
  0x44   : > { %624 = vrot.lane.b32.xlu1 %v2416_v56, %s2182_s24 }
  0x45   : > { %v2465_v19 = vsel %vm566_vm0, %v590_v57, %v592_v49  ;;  %v2514_v57 = vld [vmem:[%s2238_s22 + $0x30] sm:$0xff]  }
  0x46   : > { %v836_v7 = vrot.slane %v2514_v57, 2  ;;  %v2534_v12 = vshrl.u32 %v2514_v57, 16  ;;  %v3622_v61 = vrot.slane %v2514_v57, 3 }
  0x47   : > { %610 = vrot.lane.b32.xlu0 %v575_v63, %s2182_s24 }
  0x48   : > { %626 = vrot.lane.b32.xlu1 %v591_v0, %s2182_s24  ;;  %v2554_v34 = vsel %vm826_vm1, %v834_v37, %v836_v7 }
  0x4b   : > { %661 = vrot.lane.b32.xlu0 %v575_v63, %s2181_s23  ;;  %v835_v63 = vsel %vm826_vm1, %v832_v13, %v834_v37  ;;  %v2531_v13 = vshll.u32 %v2514_v57, 16  ;;  %v976_v37 = vsel %vm956_vm4, %v2352_v25, %v975_v35  ;;  %v3613_v25 = vrot.slane %v2373_v38, 3 }
  0x4c   : > { %677 = vrot.lane.b32.xlu1 %v591_v0, %s2181_s23  ;;  %v851_v0 = vsel %vm826_vm1, %v848_v50, %v850_v54  ;;  %v1010_v50 = vrot.slane %v2539_v27, 3 }
  0x4d   : > { %v978_v41 = vrot.slane %v2531_v13, 3 }
  0x4f   : > { %663 = vrot.lane.b32.xlu0 %v2470_v20, %s2181_s23 }
  0x50   : > { %679 = vrot.lane.b32.xlu1 %v2465_v19, %s2181_s23 }
  0x53   : > { %791 = vrot.lane.b32.xlu0 %v716_v39, %s2185_s5  ;;  %v977_v39 = vrot.slane %v2534_v12, 2 }
  0x54   : > { %807 = vrot.lane.b32.xlu1 %v748_v33, %s2185_s5 }
  0x55   : > { %v2568_v54 = vor.u32 %v978_v41, %v977_v39  ;;  %v1109_v39 = vsel %vm1086_vm5, %v3613_v25, %v1108_v11  ;;  %v481_v41 = vor.u32 %v2434_v1, %v477_v51  ;;  %v3621_v51 = vrot.slane %v2531_v13, 1 }
  0x57   : > { %793 = vrot.lane.b32.xlu0 %v720_v46, %s2185_s5  ;;  %v1007_v46 = vor.u32 %v1006_v2, %v1005_v18  ;;  %v417_v2 = vor.u32 %v2315_v62, %v413_v47 }
  0x58   : > { %809 = vrot.lane.b32.xlu1 %v752_v60, %s2185_s5  ;;  %v1009_v60 = vrot.slane %v2542_v29, 2 }
  0x5b   : > { %868 = vrot.lane.b32.xlu0 %v2350_v24, %s2183_s25  ;;  %v1001_v24 = vrot.slane %v2434_v1, 2 }
  0x5c   : > { %884 = vrot.lane.b32.xlu1 %v2505_v52, %s2183_s25 }
  0x5d   : > { %v2558_v33 = vor.u32 %v1002_v16, %v1001_v24  ;;  %v980_v24 = vsel %vm956_vm4, %v975_v35, %v2568_v54  ;;  %v1092_v16 = vrot.slane %v2425_v59, 3  ;;  %v421_v35 = vrot.slane %v2445_v8, 1 }
  0x5f   : > { %870 = vrot.lane.b32.xlu0 %v835_v63, %s2183_s25  ;;  %3647 = vst [vmem:[#allocation8_spill] sm:$0xff] %v2558_v33  ;;  %v1093_v18 = vsel %vm1086_vm5, %v1090_v36, %v1092_v16  ;;  %v422_v45 = vsel %vm378_vm2, %v417_v2, %v421_v35  ;;  %v3620_v36 = vrot.slane %v2511_v55, 3  ;;  %v1095_v43 = vsel %vm1086_vm5, %v1092_v16, %v3622_v61 }
  0x60   : > { %886 = vrot.lane.b32.xlu1 %v851_v0, %s2183_s25  ;;  %v425_v47 = vor.u32 %v2448_v10, %v421_v35 }
  0x61   : > { %v1111_v1 = vsel %vm1086_vm5, %v1108_v11, %v3620_v36  ;;  %v721_v11 = vrot.slane %v2534_v12, 1 }
  0x63   : > { %921 = vrot.lane.b32.xlu0 %v835_v63, %s2186_s6  ;;  %v1008_v63 = vsel %vm956_vm4, %v2558_v33, %v1007_v46 }
  0x64   : > { %937 = vrot.lane.b32.xlu1 %v851_v0, %s2186_s6  ;;  %v2572_v0 = vor.u32 %v1010_v50, %v1009_v60  ;;  %v430_v60 = vsel %vm378_vm2, %v425_v47, %v3621_v51  ;;  %v594_v50 = vrot.slane %v2511_v55, 1 }
  0x66   : > { %v1012_v28 = vsel %vm956_vm4, %v1007_v46, %v2572_v0  ;;  %v485_v46 = vrot.slane %v2453_v15, 1  ;;  %v3619_v15 = vrot.slane %v2539_v27, 1  ;;  %v595_v16 = vsel %vm566_vm0, %v592_v49, %v594_v50 }
  0x67   : > { %923 = vrot.lane.b32.xlu0 %v2554_v34, %s2186_s6  ;;  %v754_v49 = vrot.slane %v2539_v27, 2 }
  0x68   : > { %939 = vrot.lane.b32.xlu1 %v2548_v32, %s2186_s6  ;;  %v486_v62 = vsel %vm378_vm2, %v481_v41, %v485_v46  ;;  %v489_v8 = vor.u32 %v2456_v17, %v485_v46  ;;  %v578_v17 = vrot.slane %v2514_v57, 1 }
  0x6a   : > { %v494_v10 = vsel %vm378_vm2, %v489_v8, %v3619_v15 }
  0x6b   : > { %1051 = vrot.lane.b32.xlu0 %v976_v37, %s2187_s7  ;;  %v2632_v37 = vld [vmem:[%s2238_s22 + $0x78] sm:$0xff]  }
  0x6c   : > { %1067 = vrot.lane.b32.xlu1 %v1008_v63, %s2187_s7  ;;  %v2635_v63 = vld [vmem:[%s2238_s22 + $0x38] sm:$0xff]   ;;  %v2663_v2 = vshrl.u32 %v2632_v37, 16 }
  0x6d   : > { %v2652_v59 = vshll.u32 %v2635_v63, 16 }
  0x6e   : > { %v757_v47 = vrot.slane %v2663_v2, 1  ;;  %v1013_v53 = vrot.slane %v2663_v2, 2 }
  0x6f   : > { %1053 = vrot.lane.b32.xlu0 %v980_v24, %s2187_s7  ;;  %v579_v24 = vsel %vm566_vm0, %v576_v5, %v578_v17  ;;  %v2655_v5 = vshrl.u32 %v2635_v63, 16  ;;  %v726_v46 = vrot.slane %v2652_v59, 2 }
  0x70   : > { %1069 = vrot.lane.b32.xlu1 %v1012_v28, %s2187_s7  ;;  %v3617_v28 = vrot.slane %v2632_v37, 1 }
  0x71   : > { %v725_v41 = vrot.slane %v2655_v5, 1 }
  0x73   : > { %1128 = vrot.lane.b32.xlu0 %v1093_v18, %s2188_s8  ;;  %v2660_v18 = vshll.u32 %v2632_v37, 16 }
  0x74   : > { %1144 = vrot.lane.b32.xlu1 %v1109_v39, %s2188_s8 }
  0x75   : > { %v1014_v30 = vrot.slane %v2660_v18, 3 }
  0x77   : > { %535 = vrot.lane.b32.xlu0 %v422_v45, %s2184_s26 }
  0x78   : > { %551 = vrot.lane.b32.xlu1 %v486_v62, %s2184_s26  ;;  %v2677_v62 = vsel %vm566_vm0, %v594_v50, %v3617_v28 }
  0x7b   : > { %1130 = vrot.lane.b32.xlu0 %v1095_v43, %s2188_s8  ;;  %v755_v43 = vor.u32 %v754_v49, %v753_v58 }
  0x7c   : > { %1146 = vrot.lane.b32.xlu1 %v1111_v1, %s2188_s8  ;;  %v758_v1 = vrot.slane %v2660_v18, 2 }
  0x7d   : > { %v756_v50 = vsel %vm696_vm3, %v2489_v44, %v755_v43  ;;  %v838_v44 = vrot.slane %v2635_v63, 2 }
  0x7f   : > { %537 = vrot.lane.b32.xlu0 %v430_v60, %s2184_s26 }
  0x80   : > { %553 = vrot.lane.b32.xlu1 %v494_v10, %s2184_s26  ;;  %v2687_v10 = vor.u32 %v726_v46, %v725_v41  ;;  %v854_v41 = vrot.slane %v2632_v37, 2 }
  0x83   : > { %612 = vrot.lane.b32.xlu0 %v2470_v20, %s2182_s24  ;;  %v3618_v20 = vrot.slane %v2635_v63, 1 }
  0x84   : > { %628 = vrot.lane.b32.xlu1 %v2465_v19, %s2182_s24  ;;  %v722_v19 = vrot.slane %v2531_v13, 2 }
  0x85   : > { %v2670_v35 = vsel %vm566_vm0, %v578_v17, %v3618_v20 }
  0x86   : > { %v723_v39 = vor.u32 %v722_v19, %v721_v11 }
  0x87   : > { %614 = vrot.lane.b32.xlu0 %v579_v24, %s2182_s24 }
  0x88   : > { %630 = vrot.lane.b32.xlu1 %v595_v16, %s2182_s24  ;;  %v724_v60 = vsel %vm696_vm3, %v2485_v40, %v723_v39  ;;  %v728_v11 = vsel %vm696_vm3, %v723_v39, %v2687_v10  ;;  %v2710_v39 = vld [vmem:[%s2238_s22 + $0x80] sm:$0xff]  }
  0x89   : > { %v2743_v28 = vshll.u32 %v2710_v39, 16 }
  0x8b   : > { %665 = vrot.lane.b32.xlu0 %v579_v24, %s2181_s23  ;;  %v2693_v24 = vor.u32 %v758_v1, %v757_v47  ;;  %v2713_v47 = vld [vmem:[%s2238_s22 + $0x40] sm:$0xff]  }
  0x8c   : > { %681 = vrot.lane.b32.xlu1 %v595_v16, %s2181_s23  ;;  %v2738_v25 = vshrl.u32 %v2713_v47, 16 }
  0x8d   : > { %v658_v45 = vpop.permute.xlu0 %657  ;;  %v760_v19 = vsel %vm696_vm3, %v755_v43, %v2693_v24  ;;  %v839_v43 = vsel %vm826_vm1, %v836_v7, %v838_v44  ;;  %v981_v7 = vrot.slane %v2655_v5, 2 }
  0x8e   : > { %v605_v8 = vpop.permute.xlu1 %604  ;;  %v985_v51 = vrot.slane %v2738_v25, 2 }
  0x8f   : > { %667 = vrot.lane.b32.xlu0 %v2670_v35, %s2181_s23 }
  0x90   : > { %683 = vrot.lane.b32.xlu1 %v2677_v62, %s2181_s23 }
  0x91   : > { %v2689_v17 = vpop.permute.xlu0 %864 }
  0x92   : > { %v607_v16 = vpop.permute.xlu1 %606 }
  0x93   : > { %795 = vrot.lane.b32.xlu0 %v724_v60, %s2185_s5 }
  0x94   : > { %811 = vrot.lane.b32.xlu1 %v756_v50, %s2185_s5 }
  0x95   : > { %v528_v40 = vpop.permute.xlu0 %527 }
  0x96   : > { %v660_v58 = vpop.permute.xlu1 %659  ;;  %v1162_v1 = vsel %vm1160_vm7, %v2257_v14, %v528_v40 }
  0x97   : > { %797 = vrot.lane.b32.xlu0 %v728_v11, %s2185_s5  ;;  %v3628_v11 = vrot.slane %v2713_v47, 2  ;;  %v1199_v14 = vsel %vm1197_vm8, %v1162_v1, %v605_v8  ;;  %v2746_v8 = vshrl.u32 %v2710_v39, 16 }
  0x98   : > { %813 = vrot.lane.b32.xlu1 %v760_v19, %s2185_s5  ;;  %v982_v19 = vrot.slane %v2652_v59, 3  ;;  %v1236_v1 = vsel %vm1234_vm9, %v1199_v14, %v658_v45 }
  0x99   : > { %v530_v49 = vpop.permute.xlu0 %529  ;;  %v2754_v20 = vsel %vm826_vm1, %v838_v44, %v3628_v11  ;;  %v1017_v14 = vrot.slane %v2746_v8, 2  ;;  %v1018_v44 = vrot.slane %v2743_v28, 3 }
  0x9a   : > { %v2705_v46 = vpop.permute.xlu1 %866  ;;  %v1164_v40 = vsel %vm1160_vm7, %v2252_v9, %v530_v49  ;;  %v983_v36 = vor.u32 %v982_v19, %v981_v7 }
  0x9b   : > { %872 = vrot.lane.b32.xlu0 %v2554_v34, %s2183_s25  ;;  %v855_v34 = vsel %vm826_vm1, %v852_v6, %v854_v41  ;;  %v2735_v6 = vshll.u32 %v2713_v47, 16  ;;  %v1201_v49 = vsel %vm1197_vm8, %v1164_v40, %v607_v16  ;;  %v2783_v40 = vor.u32 %v1018_v44, %v1017_v14 }
  0x9c   : > { %888 = vrot.lane.b32.xlu1 %v2548_v32, %s2183_s25  ;;  %v3627_v32 = vrot.slane %v2710_v39, 2 }
  0x9d   : > { %v788_v60 = vpop.permute.xlu0 %787  ;;  %v986_v61 = vrot.slane %v2735_v6, 3 }
  0x9e   : > { %v790_v50 = vpop.permute.xlu1 %789  ;;  %v1273_v15 = vsel %vm1271_vm10, %v1236_v1, %v788_v60  ;;  %v2763_v45 = vsel %vm826_vm1, %v854_v41, %v3627_v32  ;;  %v1238_v60 = vsel %vm1234_vm9, %v1201_v49, %v660_v58 }
  0x9f   : > { %874 = vrot.lane.b32.xlu0 %v839_v43, %s2183_s25  ;;  %v1310_v7 = vsel %vm1308_vm11, %v1273_v15, %v2689_v17  ;;  %v1275_v58 = vsel %vm1271_vm10, %v1238_v60, %v790_v50  ;;  %v3649_v60 = vrot.slane %v2531_v13, 1 }
  0xa0   : > { %890 = vrot.lane.b32.xlu1 %v855_v34, %s2183_s25 }
  0xa1   : > { %v918_v48 = vpop.permute.xlu0 %917 }
  0xa2   : > { %v920_v9 = vpop.permute.xlu1 %919  ;;  %v1347_v19 = vsel %vm1345_vm12, %v1310_v7, %v918_v48  ;;  %v437_v7 = vrot.slane %v2652_v59, 1 }
  0xa3   : > { %925 = vrot.lane.b32.xlu0 %v839_v43, %s2186_s6  ;;  %v1015_v43 = vor.u32 %v1014_v30, %v1013_v53  ;;  %v984_v30 = vsel %vm956_vm4, %v2568_v54, %v983_v36  ;;  %v2777_v53 = vor.u32 %v986_v61, %v985_v51  ;;  %v1312_v54 = vsel %vm1308_vm11, %v1275_v58, %v2705_v46 }
  0xa4   : > { %941 = vrot.lane.b32.xlu1 %v855_v34, %s2186_s6  ;;  %v1349_v51 = vsel %vm1345_vm12, %v1312_v54, %v920_v9  ;;  %v3651_v58 = vrot.slane %v2539_v27, 1  ;;  %v3624_v27 = vrot.slane %v2710_v39, 3 }
  0xa5   : > { %v1048_v16 = vpop.permute.xlu0 %1047  ;;  %v1016_v17 = vsel %vm956_vm4, %v2572_v0, %v1015_v43  ;;  %v988_v61 = vsel %vm956_vm4, %v983_v36, %v2777_v53  ;;  %v1096_v0 = vrot.slane %v2635_v63, 3  ;;  %v1020_v1 = vsel %vm956_vm4, %v1015_v43, %v2783_v40 }
  0xa6   : > { %v1050_v34 = vpop.permute.xlu1 %1049  ;;  %v1384_v41 = vsel %vm1382_vm13, %v1347_v19, %v1048_v16  ;;  %v1112_v16 = vrot.slane %v2632_v37, 3  ;;  %v3648_v36 = vrot.slane %v2514_v57, 3  ;;  %v433_v43 = vor.u32 %v2534_v12, %v3649_v60  ;;  %v2874_v60 = vld [vmem:[%s2238_s22 + $0x88] sm:$0xff]  }
  0xa7   : > { %927 = vrot.lane.b32.xlu0 %v2754_v20, %s2186_s6  ;;  %v1386_v14 = vsel %vm1382_vm13, %v1349_v51, %v1050_v34  ;;  %v3650_v19 = vrot.slane %v2511_v55, 3  ;;  %v501_v57 = vrot.slane %v2660_v18, 1  ;;  %v3626_v12 = vrot.slane %v2713_v47, 3 }
  0xa8   : > { %943 = vrot.lane.b32.xlu1 %v2763_v45, %s2186_s6  ;;  %v1097_v9 = vsel %vm1086_vm5, %v3648_v36, %v1096_v0  ;;  %v438_v13 = vsel %vm378_vm2, %v433_v43, %v437_v7  ;;  %v441_v18 = vor.u32 %v2655_v5, %v437_v7  ;;  %v598_v36 = vrot.slane %v2710_v39, 1  ;;  %v2877_v43 = vld [vmem:[%s2238_s22 + $0x48] sm:$0xff]  }
  0xa9   : > { %v1125_v15 = vpop.permute.xlu0 %1124  ;;  %v505_v51 = vor.u32 %v2663_v2, %v501_v57  ;;  %v3652_v7 = vrot.slane %v2635_v63, 1  ;;  %v729_v63 = vrot.slane %v2738_v25, 1 }
  0xaa   : > { %v2785_v48 = vpop.permute.xlu1 %531  ;;  %v1421_v49 = vsel %vm1419_vm14, %v1384_v41, %v1125_v15  ;;  %v497_v41 = vor.u32 %v2542_v29, %v3651_v58  ;;  %v1099_v29 = vsel %vm1086_vm5, %v1096_v0, %v3626_v12  ;;  %v3653_v58 = vrot.slane %v2632_v37, 1 }
  0xab   : > { %1055 = vrot.lane.b32.xlu0 %v984_v30, %s2187_s7  ;;  %2033 = vmatprep.mubr.msk.bf16.mxu0 %vm1483_vm15, %v1421_v49  ;;  %v1113_v30 = vsel %vm1086_vm5, %v3650_v19, %v1112_v16  ;;  %v3625_v49 = vrot.slane %v2735_v6, 1  ;;  %v2903_v37 = vshrl.u32 %v2877_v43, 16 }
  0xac   : > { %1071 = vrot.lane.b32.xlu1 %v1016_v17, %s2187_s7  ;;  %v502_v55 = vsel %vm378_vm2, %v497_v41, %v501_v57  ;;  %v599_v41 = vsel %vm566_vm0, %v3653_v58, %v598_v36 }
  0xad   : > { %v2797_v50 = vpop.permute.xlu0 %547  ;;  %v446_v5 = vsel %vm378_vm2, %v441_v18, %v3625_v49  ;;  %v761_v18 = vrot.slane %v2746_v8, 1  ;;  %v989_v42 = vrot.slane %v2903_v37, 2 }
  0xae   : > { %v1127_v44 = vpop.permute.xlu1 %1126  ;;  %v1182_v21 = vsel %vm1160_vm7, %v2321_v3, %v2797_v50 }
  0xaf   : > { %v1423_v46 = vsel %vm1419_vm14, %v1386_v14, %v1127_v44  ;;  %1057 = vrot.lane.b32.xlu0 %v988_v61, %s2187_s7  ;;  %v1115_v61 = vsel %vm1086_vm5, %v1112_v16, %v3624_v27  ;;  %v582_v44 = vrot.slane %v2713_v47, 1 }
  0xb0   : > { %1073 = vrot.lane.b32.xlu1 %v1020_v1, %s2187_s7  ;;  %2034 = vmatmul.mubr.msk.bf16.vlgmr.msra.gmra.mrb[0].mxu0 %vm1483_vm15, %v1423_v46  ;;  %v3623_v1 = vrot.slane %v2743_v28, 1 }
  0xb1   : > { %v2814_v34 = vpop.permute.xlu0 %533  ;;  %v583_v19 = vsel %vm566_vm0, %v3652_v7, %v582_v44 }
  0xb2   : > { %v2823_v15 = vpop.permute.xlu1 %549  ;;  %v510_v2 = vsel %vm378_vm2, %v505_v51, %v3623_v1  ;;  %v2910_v51 = vshll.u32 %v2874_v60, 16  ;;  %v733_v1 = vrot.slane %v2903_v37, 1 }
  0xb3   : > { %1132 = vrot.lane.b32.xlu0 %v1097_v9, %s2188_s8 }
  0xb4   : > { %1148 = vrot.lane.b32.xlu1 %v1113_v30, %s2188_s8 }
  0xb5   : > { %v2829_v59 = vpop.permute.xlu0 %608 }
  0xb6   : > { %v2833_v17 = vpop.permute.xlu1 %624 }
  0xb7   : > { %539 = vrot.lane.b32.xlu0 %v438_v13, %s2184_s26  ;;  %v3629_v13 = vrot.slane %v2877_v43, 1 }
  0xb8   : > { %555 = vrot.lane.b32.xlu1 %v502_v55, %s2184_s26  ;;  %v2900_v55 = vshll.u32 %v2877_v43, 16 }
  0xb9   : > { %v2842_v54 = vpop.permute.xlu0 %610  ;;  %v2922_v7 = vsel %vm566_vm0, %v582_v44, %v3629_v13 }
  0xba   : > { %v2849_v14 = vpop.permute.xlu1 %626  ;;  %v734_v27 = vrot.slane %v2900_v55, 2 }
  0xbb   : > { %1134 = vrot.lane.b32.xlu0 %v1099_v29, %s2188_s8 }
  0xbc   : > { %1150 = vrot.lane.b32.xlu1 %v1115_v61, %s2188_s8  ;;  %v762_v61 = vrot.slane %v2743_v28, 2 }
  0xbd   : > { %v2856_v0 = vpop.permute.xlu0 %661 }
  0xbe   : > { %v2861_v16 = vpop.permute.xlu1 %677  ;;  %v763_v32 = vor.u32 %v762_v61, %v761_v18 }
  0xbf   : > { %541 = vrot.lane.b32.xlu0 %v446_v5, %s2184_s26  ;;  %v2913_v5 = vshrl.u32 %v2874_v60, 16 }
  0xc0   : > { %557 = vrot.lane.b32.xlu1 %v510_v2, %s2184_s26 }
  0xc1   : > { %v2866_v46 = vpop.permute.xlu0 %663 }
  0xc2   : > { %v2869_v9 = vpop.permute.xlu1 %679 }
  0xc3   : > { %616 = vrot.lane.b32.xlu0 %v2670_v35, %s2182_s24  ;;  %v2893_v35 = vrot.slane %v2874_v60, 1 }
  0xc4   : > { %632 = vrot.lane.b32.xlu1 %v2677_v62, %s2182_s24  ;;  %v730_v62 = vrot.slane %v2735_v6, 2 }
  0xc5   : > { %v2884_v30 = vpop.permute.xlu0 %791  ;;  %3654 = vst [vmem:[#allocation9_spill] sm:$0xff] %v2893_v35  ;;  %v2928_v12 = vsel %vm566_vm0, %v598_v36, %v2893_v35  ;;  %v764_v36 = vsel %vm696_vm3, %v2693_v24, %v763_v32  ;;  %v842_v24 = vrot.slane %v2877_v43, 2 }
  0xc6   : > { %v2889_v57 = vpop.permute.xlu1 %807  ;;  %v731_v58 = vor.u32 %v730_v62, %v729_v63  ;;  %v2938_v63 = vor.u32 %v734_v27, %v733_v1 }
  0xc7   : > { %618 = vrot.lane.b32.xlu0 %v583_v19, %s2182_s24 }
  0xc8   : > { %634 = vrot.lane.b32.xlu1 %v599_v41, %s2182_s24  ;;  %v732_v44 = vsel %vm696_vm3, %v2687_v10, %v731_v58  ;;  %3655 = vst [vmem:[#allocation10_spill] sm:$0xff] %v2938_v63  ;;  %v736_v13 = vsel %vm696_vm3, %v731_v58, %v2938_v63 }
  0xc9   : > { %v2905_v29 = vpop.permute.xlu0 %793 }
  0xca   : > { %v2915_v2 = vpop.permute.xlu1 %809 }
  0xcb   : > { %669 = vrot.lane.b32.xlu0 %v583_v19, %s2181_s23  ;;  %v765_v19 = vrot.slane %v2913_v5, 1 }
  0xcc   : > { %685 = vrot.lane.b32.xlu1 %v599_v41, %s2181_s23  ;;  %v766_v41 = vrot.slane %v2910_v51, 2 }
  0xcd   : > { %v869_v49 = vpop.permute.xlu0 %868 }
  0xce   : > { %v885_v11 = vpop.permute.xlu1 %884  ;;  %v2944_v18 = vor.u32 %v766_v41, %v765_v19  ;;  %v858_v41 = vrot.slane %v2874_v60, 2 }
  0xcf   : > { %671 = vrot.lane.b32.xlu0 %v2922_v7, %s2181_s23 }
  0xd0   : > { %687 = vrot.lane.b32.xlu1 %v2928_v12, %s2181_s23  ;;  %3656 = vst [vmem:[#allocation11_spill] sm:$0xff] %v2944_v18  ;;  %v768_v27 = vsel %vm696_vm3, %v763_v32, %v2944_v18  ;;  %v3657_v32 = vrot.slane %v2713_v47, 2 }
  0xd1   : > { %v2940_v62 = vpop.permute.xlu0 %870 }
  0xd2   : > { %v2946_v61 = vpop.permute.xlu1 %886 }
  0xd3   : > { %799 = vrot.lane.b32.xlu0 %v732_v44, %s2185_s5 }
  0xd4   : > { %815 = vrot.lane.b32.xlu1 %v764_v36, %s2185_s5  ;;  %v2963_v36 = vld [vmem:[%s2238_s22 + $0x90] sm:$0xff]  }
  0xd5   : > { %v922_v10 = vpop.permute.xlu0 %921  ;;  %v2976_v52 = vrot.slane %v2963_v36, 2  ;;  %v770_v63 = vshrl.u32 %v2963_v36, 16  ;;  %v773_v56 = vshll.u32 %v2963_v36, 16 }
  0xd6   : > { %v938_v1 = vpop.permute.xlu1 %937 }
  0xd7   : > { %801 = vrot.lane.b32.xlu0 %v736_v13, %s2185_s5  ;;  %v843_v13 = vsel %vm826_vm1, %v3657_v32, %v842_v24  ;;  %v1022_v32 = vrot.slane %v2910_v51, 3 }
  0xd8   : > { %817 = vrot.lane.b32.xlu1 %v768_v27, %s2185_s5  ;;  %v3658_v27 = vrot.slane %v2710_v39, 2 }
  0xd9   : > { %v2957_v19 = vpop.permute.xlu0 %923 }
  0xda   : > { %v2960_v44 = vpop.permute.xlu1 %939  ;;  %v859_v38 = vsel %vm826_vm1, %v3658_v27, %v858_v41  ;;  %v990_v27 = vrot.slane %v2900_v55, 3 }
  0xdb   : > { %876 = vrot.lane.b32.xlu0 %v2754_v20, %s2183_s25  ;;  %v1021_v20 = vrot.slane %v2913_v5, 2 }
  0xdc   : > { %892 = vrot.lane.b32.xlu1 %v2763_v45, %s2183_s25  ;;  %v1166_v45 = vsel %vm1160_vm7, %v2247_v4, %v2785_v48  ;;  %v1219_v4 = vsel %vm1197_vm8, %v1182_v21, %v2833_v17  ;;  %v3659_v21 = vrot.slane %v2321_v3, 2 }
  0xdd   : > { %v1052_v58 = vpop.permute.xlu0 %1051  ;;  %v1203_v31 = vsel %vm1197_vm8, %v1166_v45, %v2829_v59  ;;  %v1256_v35 = vsel %vm1234_vm9, %v1219_v4, %v2861_v16  ;;  %v3005_v45 = vsel %vm826_vm1, %v858_v41, %v2976_v52  ;;  %v1023_v16 = vor.u32 %v1022_v32, %v1021_v20 }
  0xde   : > { %v1068_v33 = vpop.permute.xlu1 %1067  ;;  %v1240_v48 = vsel %vm1234_vm9, %v1203_v31, %v2856_v0  ;;  %v3010_v31 = vsel %vm826_vm1, %v842_v24, %v3659_v21  ;;  %v1293_v17 = vsel %vm1271_vm10, %v1256_v35, %v2889_v57  ;;  %v994_v24 = vrot.slane %v2345_v23, 3 }
  0xdf   : > { %878 = vrot.lane.b32.xlu0 %v843_v13, %s2183_s25  ;;  %v1277_v50 = vsel %vm1271_vm10, %v1240_v48, %v2884_v30  ;;  %v991_v30 = vor.u32 %v990_v27, %v989_v42  ;;  %v1330_v4 = vsel %vm1308_vm11, %v1293_v17, %v885_v11  ;;  %v993_v48 = vrot.slane %v2357_v26, 2 }
  0xe0   : > { %894 = vrot.lane.b32.xlu1 %v859_v38, %s2183_s25  ;;  %v1314_v0 = vsel %vm1308_vm11, %v1277_v50, %v869_v49  ;;  %v1367_v21 = vsel %vm1345_vm12, %v1330_v4, %v938_v1  ;;  %v1025_v35 = vrot.slane %v770_v63, 2  ;;  %v1026_v42 = vrot.slane %v773_v56, 3 }
  0xe1   : > { %v1054_v18 = vpop.permute.xlu0 %1053  ;;  %v1351_v41 = vsel %vm1345_vm12, %v1314_v0, %v922_v10  ;;  %v1404_v11 = vsel %vm1382_vm13, %v1367_v21, %v1068_v33  ;;  %v1184_v33 = vsel %vm1160_vm7, %v2342_v22, %v2823_v15  ;;  %v1024_v15 = vsel %vm956_vm4, %v2783_v40, %v1023_v16 }
  0xe2   : > { %v1070_v59 = vpop.permute.xlu1 %1069  ;;  %v1388_v57 = vsel %vm1382_vm13, %v1351_v41, %v1052_v58  ;;  %v992_v58 = vsel %vm956_vm4, %v2777_v53, %v991_v30  ;;  %v1221_v27 = vsel %vm1197_vm8, %v1184_v33, %v2849_v14  ;;  %v3056_v17 = vor.u32 %v1026_v42, %v1025_v35 }
  0xe3   : > { %929 = vrot.lane.b32.xlu0 %v843_v13, %s2186_s6  ;;  %v2144_v13 = vld [vmem:[%s2238_s22 + $0x18] sm:$0xff]   ;;  %v3662_v42 = vrot.slane %v2710_v39, 3 }
  0xe4   : > { %945 = vrot.lane.b32.xlu1 %v859_v38, %s2186_s6  ;;  %v1168_v20 = vsel %vm1160_vm7, %v2144_v13, %v2814_v34  ;;  %v3046_v34 = vor.u32 %v994_v24, %v993_v48  ;;  %v1028_v24 = vsel %vm956_vm4, %v1023_v16, %v3056_v17  ;;  %v2138_v13 = vld [vmem:[%s2238_s22 + $0x90] ss:$0 sps:$4 sm:$0x11]  }
  0xe5   : > { %v1129_v49 = vpop.permute.xlu0 %1128  ;;  %v1205_v32 = vsel %vm1197_vm8, %v1168_v20, %v2842_v54  ;;  %v1258_v54 = vsel %vm1234_vm9, %v1221_v27, %v2869_v9 }
  0xe6   : > { %v1145_v10 = vpop.permute.xlu1 %1144  ;;  %v1425_v38 = vsel %vm1419_vm14, %v1388_v57, %v1129_v49  ;;  %v1242_v53 = vsel %vm1234_vm9, %v1205_v32, %v2866_v46  ;;  %v1295_v14 = vsel %vm1271_vm10, %v1258_v54, %v2915_v2  ;;  %v996_v9 = vsel %vm956_vm4, %v991_v30, %v3046_v34 }
  0xe7   : > { %931 = vrot.lane.b32.xlu0 %v3010_v31, %s2186_s6  ;;  %2037 = vmatprep.mubr.msk.bf16.mxu0 %vm1483_vm15, %v1425_v38  ;;  %v1441_v1 = vsel %vm1419_vm14, %v1404_v11, %v1145_v10  ;;  %v1279_v0 = vsel %vm1271_vm10, %v1242_v53, %v2905_v29  ;;  %v1332_v40 = vsel %vm1308_vm11, %v1295_v14, %v2946_v61  ;;  %v1100_v29 = vrot.slane %v2877_v43, 3 }
  0xe8   : > { %947 = vrot.lane.b32.xlu1 %v3005_v45, %s2186_s6  ;;  %2053 = vmatprep.mubr.msk.bf16.mxu1 %vm1483_vm15, %v1441_v1  ;;  %v1316_v46 = vsel %vm1308_vm11, %v1279_v0, %v2940_v62  ;;  %v1369_v2 = vsel %vm1345_vm12, %v1332_v40, %v2960_v44  ;;  %v1116_v61 = vrot.slane %v2874_v60, 3  ;;  %v453_v49 = vrot.slane %v2900_v55, 1 }
  0xe9   : > { %v3052_v50 = vpop.permute.xlu0 %535  ;;  %v1353_v41 = vsel %vm1345_vm12, %v1316_v46, %v2957_v19  ;;  %v1406_v19 = vsel %vm1382_vm13, %v1369_v2, %v1070_v59  ;;  %v3661_v59 = vrot.slane %v2735_v6, 1  ;;  %v3663_v10 = vrot.slane %v2743_v28, 1  ;;  %v3113_v6 = vld [vmem:[%s2238_s22 + $0x50] sm:$0xff]  }
  0xea   : > { %v3062_v4 = vpop.permute.xlu1 %551  ;;  %v1390_v62 = vsel %vm1382_vm13, %v1353_v41, %v1054_v18  ;;  %v3660_v18 = vrot.slane %v2713_v47, 3  ;;  %v1117_v11 = vsel %vm1086_vm5, %v3662_v42, %v1116_v61  ;;  %v517_v47 = vrot.slane %v2910_v51, 1 }
  0xeb   : > { %1059 = vrot.lane.b32.xlu0 %v992_v58, %s2187_s7  ;;  %v449_v16 = vor.u32 %v2738_v25, %v3661_v59  ;;  %v513_v38 = vor.u32 %v2746_v8, %v3663_v10  ;;  %v1102_v39 = vrot.slane %v3113_v6, 3  ;;  %v1118_v8 = vrot.slane %v2963_v36, 3 }
  0xec   : > { %1075 = vrot.lane.b32.xlu1 %v1024_v15, %s2187_s7  ;;  %v1101_v44 = vsel %vm1086_vm5, %v3660_v18, %v1100_v29  ;;  %v523_v51 = vshll.u32 %v2138_v13, 16  ;;  %v457_v33 = vor.u32 %v2903_v37, %v453_v49  ;;  %v521_v53 = vor.u32 %v2913_v5, %v517_v47 }
  0xed   : > { %v1131_v48 = vpop.permute.xlu0 %1130  ;;  %v454_v25 = vsel %vm378_vm2, %v449_v16, %v453_v49  ;;  %v518_v28 = vsel %vm378_vm2, %v513_v38, %v517_v47  ;;  %v1103_v58 = vsel %vm1086_vm5, %v1100_v29, %v1102_v39  ;;  %v1119_v27 = vsel %vm1086_vm5, %v1116_v61, %v1118_v8 }
  0xee   : > { %v1147_v21 = vpop.permute.xlu1 %1146  ;;  %v1427_v57 = vsel %vm1419_vm14, %v1390_v62, %v1131_v48  ;;  %v525_v15 = vrot.slane %v523_v51, 1  ;;  %v3664_v0 = vrot.slane %v2345_v23, 1  ;;  %v602_v41 = vrot.slane %v2138_v13, 1 }
  0xef   : > { %v1443_v30 = vsel %vm1419_vm14, %v1406_v19, %v1147_v21  ;;  %1061 = vrot.lane.b32.xlu0 %v996_v9, %s2187_s7  ;;  %2038 = vmatmul.mubr.msk.bf16.gmra.mrb[4].mxu0 %vm1483_vm15, %v1427_v57  ;;  %v3665_v29 = vrot.slane %v2321_v3, 1  ;;  %v3666_v2 = vrot.slane %v2877_v43, 1  ;;  %v653_v48 = vrot.slane %v2963_v36, 1  ;;  %v3667_v19 = vld [vmem:[#allocation9_spill] sm:$0xff] }
  0xf0   : > { %1077 = vrot.lane.b32.xlu1 %v1028_v24, %s2187_s7  ;;  %2054 = vmatmul.mubr.msk.bf16.vlgmr.msra.gmra.mrb[0].mxu1 %vm1483_vm15, %v1443_v30  ;;  %v462_v37 = vsel %vm378_vm2, %v457_v33, %v3664_v0  ;;  %v526_v46 = vsel %vm378_vm2, %v521_v53, %v525_v15  ;;  %v2139_v24 = vld [vmem:[%s2238_s22 + $0x98] ss:$0 sps:$4 sm:$0x11]   ;;  %v603_v21 = vsel %vm566_vm0, %v3667_v19, %v602_v41  ;;  %v737_v18 = vrot.slane %v2357_v26, 1  ;;  %v3670_v33 = vld [vmem:[#allocation11_spill] sm:$0xff]  ;;  %v3671_v0 = vld [vmem:[#allocation6_spill] sm:$0xff] }
  0xf1   : > { %v3097_v35 = vpop.permute.xlu0 %537  ;;  %v587_v62 = vsel %vm566_vm0, %v3666_v2, %v3665_v29  ;;  %v2140_v57 = vld [vmem:[%s2238_s22 + $0x98] ss:$0 sps:$4 sm:$0x33]   ;;  %v772_v16 = vrot.slane %v770_v63, 1  ;;  %v775_v49 = vrot.slane %v773_v56, 2  ;;  %v3669_v56 = vld [vmem:[#allocation10_spill] sm:$0xff] }
  0xf2   : > { %v3107_v20 = vpop.permute.xlu1 %553  ;;  %v779_v42 = vshrl.u32 %v2140_v57, 16  ;;  %v3204_v2 = vld [vmem:[%s2238_s22 + $0x98] sm:$0xff]  }
  0xf3   : > { %1136 = vrot.lane.b32.xlu0 %v1101_v44, %s2188_s8  ;;  %v738_v44 = vrot.slane %v2345_v23, 2  ;;  %v776_v47 = vor.u32 %v775_v49, %v772_v16 }
  0xf4   : > { %1152 = vrot.lane.b32.xlu1 %v1117_v11, %s2188_s8  ;;  %v782_v11 = vshll.u32 %v2140_v57, 16  ;;  %v781_v13 = vrot.slane %v779_v42, 1 }
  0xf5   : > { %v3116_v55 = vpop.permute.xlu0 %612  ;;  %v739_v38 = vor.u32 %v738_v44, %v737_v18  ;;  %v3672_v18 = vrot.slane %v2342_v22, 2 }
  0xf6   : > { %v3120_v1 = vpop.permute.xlu1 %628 }
  0xf7   : > { %543 = vrot.lane.b32.xlu0 %v454_v25, %s2184_s26  ;;  %v784_v25 = vrot.slane %v782_v11, 2  ;;  %v740_v51 = vsel %vm696_vm3, %v3669_v56, %v739_v38  ;;  %v3675_v56 = vld [vmem:[#allocation2_spill] sm:$0xff] }
  0xf8   : > { %559 = vrot.lane.b32.xlu1 %v518_v28, %s2184_s26  ;;  %v3668_v28 = vld [vmem:[#allocation5_spill] sm:$0xff] }
  0xf9   : > { %v3128_v32 = vpop.permute.xlu0 %614  ;;  %v785_v53 = vor.u32 %v784_v25, %v781_v13 }
  0xfa   : > { %v3134_v54 = vpop.permute.xlu1 %630 }
  0xfb   : > { %1138 = vrot.lane.b32.xlu0 %v1103_v58, %s2188_s8  ;;  %v786_v41 = vsel %vm696_vm3, %v776_v47, %v785_v53 }
  0xfc   : > { %1154 = vrot.lane.b32.xlu1 %v1119_v27, %s2188_s8  ;;  %v777_v27 = vsel %vm696_vm3, %v3670_v33, %v776_v47  ;;  %v2147_v47 = vld [vmem:[%s2238_s22 + $0x60] sm:$0xff]  }
  0xfd   : > { %v3141_v14 = vpop.permute.xlu0 %665  ;;  %v1186_v13 = vsel %vm1160_vm7, %v2147_v47, %v3062_v4 }
  0xfe   : > { %v3144_v40 = vpop.permute.xlu1 %681 }
  0xff   : > { %545 = vrot.lane.b32.xlu0 %v462_v37, %s2184_s26  ;;  %v744_v37 = vsel %vm696_vm3, %v739_v38, %v3671_v0  ;;  %v2146_v38 = vld [vmem:[%s2238_s22 + $0x20] sm:$0xff]  }
 0x100   : > { %561 = vrot.lane.b32.xlu1 %v526_v46, %s2184_s26 }
 0x101   : > { %v3148_v5 = vpop.permute.xlu0 %667 }
 0x102   : > { %v3150_v9 = vpop.permute.xlu1 %683 }
 0x103   : > { %620 = vrot.lane.b32.xlu0 %v2922_v7, %s2182_s24  ;;  %v655_v7 = vrot.slane %v2139_v24, 1 }
 0x104   : > { %636 = vrot.lane.b32.xlu1 %v2928_v12, %s2182_s24  ;;  %v654_v12 = vsel %vm566_vm0, %v3667_v19, %v653_v48  ;;  %v913_v19 = vrot.slane %v3204_v2, 2 }
 0x105   : > { %v3163_v61 = vpop.permute.xlu0 %795  ;;  %v656_v23 = vsel %vm566_vm0, %v653_v48, %v655_v7  ;;  %v862_v48 = vrot.slane %v2140_v57, 2  ;;  %v1033_v7 = vshll.u32 %v3204_v2, 16  ;;  %v3673_v57 = vrot.slane %v2321_v3, 2 }
 0x106   : > { %v3168_v30 = vpop.permute.xlu1 %811  ;;  %v914_v11 = vsel %vm826_vm1, %v2976_v52, %v913_v19 }
 0x107   : > { %622 = vrot.lane.b32.xlu0 %v587_v62, %s2182_s24  ;;  %v847_v44 = vsel %vm826_vm1, %v3673_v57, %v3672_v18  ;;  %v863_v49 = vsel %vm826_vm1, %v2976_v52, %v862_v48 }
 0x108   : > { %638 = vrot.lane.b32.xlu1 %v603_v21, %s2182_s24  ;;  %v2142_v21 = vld [vmem:[%s2238_s22 + $0xa0] ss:$0 sps:$4 sm:$0x33]  }
 0x109   : > { %v3176_v59 = vpop.permute.xlu0 %797  ;;  %v915_v22 = vrot.slane %v2142_v21, 2 }
 0x10a   : > { %v3182_v10 = vpop.permute.xlu1 %813 }
 0x10b   : > { %673 = vrot.lane.b32.xlu0 %v587_v62, %s2181_s23 }
 0x10c   : > { %689 = vrot.lane.b32.xlu1 %v654_v12, %s2181_s23  ;;  %v1030_v12 = vshrl.u32 %v3204_v2, 16 }
 0x10d   : > { %v873_v26 = vpop.permute.xlu0 %872 }
 0x10e   : > { %v889_v63 = vpop.permute.xlu1 %888  ;;  %v1032_v3 = vrot.slane %v1030_v12, 2 }
 0x10f   : > { %675 = vrot.lane.b32.xlu0 %v3668_v28, %s2181_s23  ;;  %v3674_v28 = vld [vmem:[#allocation4_spill] sm:$0xff] }
 0x110   : > { %691 = vrot.lane.b32.xlu1 %v656_v23, %s2181_s23  ;;  %v1035_v23 = vrot.slane %v1033_v7, 3  ;;  %v997_v52 = vrot.slane %v3674_v28, 2  ;;  %s3407_s23 = scalar_lea.vmem %s3612_s4, %s2078_s13 }
 0x111   : > { %v3192_v58 = vpop.permute.xlu0 %874 }
 0x112   : > { %v3196_v15 = vpop.permute.xlu1 %890 }
 0x113   : > { %803 = vrot.lane.b32.xlu0 %v740_v51, %s2185_s5  ;;  %v998_v51 = vrot.slane %v3675_v56, 3 }
 0x114   : > { %819 = vrot.lane.b32.xlu1 %v777_v27, %s2185_s5 }
 0x115   : > { %v926_v46 = vpop.permute.xlu0 %925 }
 0x116   : > { %v942_v29 = vpop.permute.xlu1 %941 }
 0x117   : > { %805 = vrot.lane.b32.xlu0 %v744_v37, %s2185_s5 }
 0x118   : > { %821 = vrot.lane.b32.xlu1 %v786_v41, %s2185_s5 }
 0x119   : > { %v3208_v62 = vpop.permute.xlu0 %927 }
 0x11a   : > { %v3210_v24 = vpop.permute.xlu1 %943 }
 0x11b   : > { %880 = vrot.lane.b32.xlu0 %v3010_v31, %s2183_s25  ;;  %v3228_v31 = vld [vmem:[%s2238_s22 + $0xa0] ss:$0 sps:$4 sm:$0x77]  }
 0x11c   : > { %896 = vrot.lane.b32.xlu1 %v3005_v45, %s2183_s25  ;;  %v1170_v45 = vsel %vm1160_vm7, %v2146_v38, %v3052_v50  ;;  %v1223_v50 = vsel %vm1197_vm8, %v1186_v13, %v3120_v1  ;;  %v1039_v53 = vshrl.u32 %v3228_v31, 16  ;;  %v1042_v4 = vshll.u32 %v3228_v31, 16  ;;  %v2150_v13 = vld [vmem:[%s2238_s22 + $0x58] sm:$0xff]  }
 0x11d   : > { %v1056_v16 = vpop.permute.xlu0 %1055  ;;  %v1207_v25 = vsel %vm1197_vm8, %v1170_v45, %v3116_v55  ;;  %v1260_v55 = vsel %vm1234_vm9, %v1223_v50, %v3144_v40  ;;  %v1036_v40 = vor.u32 %v1035_v23, %v1032_v3 }
 0x11e   : > { %v1072_v42 = vpop.permute.xlu1 %1071  ;;  %v1244_v33 = vsel %vm1234_vm9, %v1207_v25, %v3141_v14  ;;  %v1297_v41 = vsel %vm1271_vm10, %v1260_v55, %v3168_v30  ;;  %v916_v14 = vsel %vm826_vm1, %v913_v19, %v915_v22  ;;  %v1044_v18 = vrot.slane %v1042_v4, 3  ;;  %v3678_v4 = vld [vmem:[#allocation3_spill] sm:$0xff] }
 0x11f   : > { %882 = vrot.lane.b32.xlu0 %v847_v44, %s2183_s25  ;;  %v1281_v0 = vsel %vm1271_vm10, %v1244_v33, %v3163_v61  ;;  %v1334_v48 = vsel %vm1308_vm11, %v1297_v41, %v889_v63  ;;  %v999_v61 = vor.u32 %v998_v51, %v997_v52  ;;  %v2148_v63 = vld [vmem:[%s2238_s22 + $0x28] sm:$0xff]   ;;  %v1104_v25 = vrot.slane %v2150_v13, 3 }
 0x120   : > { %898 = vrot.lane.b32.xlu1 %v863_v49, %s2183_s25  ;;  %v1318_v1 = vsel %vm1308_vm11, %v1281_v0, %v873_v26  ;;  %v1371_v12 = vsel %vm1345_vm12, %v1334_v48, %v942_v29  ;;  %v1041_v26 = vrot.slane %v1039_v53, 2  ;;  %v2149_v29 = vld [vmem:[%s2238_s22 + $0x68] sm:$0xff]   ;;  %v3679_v55 = vrot.slane %v3678_v4, 3 }
 0x121   : > { %v1058_v27 = vpop.permute.xlu0 %1057  ;;  %v1355_v21 = vsel %vm1345_vm12, %v1318_v1, %v926_v46  ;;  %v1408_v57 = vsel %vm1382_vm13, %v1371_v12, %v1072_v42  ;;  %v1172_v46 = vsel %vm1160_vm7, %v2148_v63, %v3097_v35  ;;  %v1000_v35 = vsel %vm956_vm4, %v3046_v34, %v999_v61 }
 0x122   : > { %v1074_v37 = vpop.permute.xlu1 %1073  ;;  %v1392_v30 = vsel %vm1382_vm13, %v1355_v21, %v1056_v16  ;;  %v1188_v16 = vsel %vm1160_vm7, %v2149_v29, %v3107_v20  ;;  %v1209_v42 = vsel %vm1197_vm8, %v1172_v46, %v3128_v32  ;;  %v1037_v20 = vsel %vm956_vm4, %v3056_v17, %v1036_v40  ;;  %v2152_v29 = vld [vmem:[%s2238_s22 + $0x70] sm:$0xff]  }
 0x123   : > { %933 = vrot.lane.b32.xlu0 %v847_v44, %s2186_s6  ;;  %v1225_v38 = vsel %vm1197_vm8, %v1188_v16, %v3134_v54  ;;  %v1246_v45 = vsel %vm1234_vm9, %v1209_v42, %v3148_v5  ;;  %v1045_v32 = vor.u32 %v1044_v18, %v1041_v26  ;;  %v1107_v0 = vsel %vm1086_vm5, %v1104_v25, %v3679_v55 }
 0x124   : > { %949 = vrot.lane.b32.xlu1 %v914_v11, %s2186_s6  ;;  %v3676_v11 = vld [vmem:[#allocation7_spill] sm:$0xff]  ;;  %v1262_v3 = vsel %vm1234_vm9, %v1225_v38, %v3150_v9  ;;  %v1283_v23 = vsel %vm1271_vm10, %v1246_v45, %v3176_v59  ;;  %v3677_v9 = vld [vmem:[#allocation8_spill] sm:$0xff] }
 0x125   : > { %v1133_v7 = vpop.permute.xlu0 %1132  ;;  %v1299_v47 = vsel %vm1271_vm10, %v1262_v3, %v3182_v10  ;;  %v1320_v54 = vsel %vm1308_vm11, %v1283_v23, %v3192_v58  ;;  %v1004_v59 = vsel %vm956_vm4, %v999_v61, %v3677_v9  ;;  %v1046_v52 = vsel %vm956_vm4, %v1036_v40, %v1045_v32 }
 0x126   : > { %v1149_v44 = vpop.permute.xlu1 %1148  ;;  %v1429_v19 = vsel %vm1419_vm14, %v1392_v30, %v1133_v7  ;;  %v1336_v5 = vsel %vm1308_vm11, %v1299_v47, %v3196_v15  ;;  %v1357_v17 = vsel %vm1345_vm12, %v1320_v54, %v3208_v62  ;;  %v1120_v15 = vrot.slane %v3204_v2, 3 }
 0x127   : > { %v1445_v49 = vsel %vm1419_vm14, %v1408_v57, %v1149_v44  ;;  %935 = vrot.lane.b32.xlu0 %v3676_v11, %s2186_s6  ;;  %2041 = vmatprep.mubr.msk.bf16.mxu0 %vm1483_vm15, %v1429_v19  ;;  %v1373_v10 = vsel %vm1345_vm12, %v1336_v5, %v3210_v24  ;;  %v1394_v58 = vsel %vm1382_vm13, %v1357_v17, %v1058_v27  ;;  %v1122_v27 = vrot.slane %v3228_v31, 3 }
 0x128   : > { %951 = vrot.lane.b32.xlu1 %v916_v14, %s2186_s6  ;;  %2057 = vmatprep.mubr.msk.bf16.mxu1 %vm1483_vm15, %v1445_v49  ;;  %v1410_v56 = vsel %vm1382_vm13, %v1373_v10, %v1074_v37  ;;  %v1105_v24 = vsel %vm1086_vm5, %v1102_v39, %v1104_v25  ;;  %v1121_v33 = vsel %vm1086_vm5, %v1118_v8, %v1120_v15  ;;  %v2151_v49 = vld [vmem:[%s2238_s22 + $0x30] sm:$0xff]   ;;  %v2153_v25 = vld [vmem:[%s2238_s22 + $0x38] sm:$0xff]  }
 0x129   : > { %v3286_v22 = vpop.permute.xlu0 %539  ;;  %v1123_v6 = vsel %vm1086_vm5, %v1120_v15, %v1122_v27 }
 0x12a   : > { %v556_v34 = vpop.permute.xlu1 %555  ;;  %v1174_v11 = vsel %vm1160_vm7, %v2151_v49, %v3286_v22 }
 0x12b   : > { %1063 = vrot.lane.b32.xlu0 %v1000_v35, %s2187_s7  ;;  %v1190_v16 = vsel %vm1160_vm7, %v2152_v29, %v556_v34 }
 0x12c   : > { %1079 = vrot.lane.b32.xlu1 %v1037_v20, %s2187_s7 }
 0x12d   : > { %v1135_v28 = vpop.permute.xlu0 %1134 }
 0x12e   : > { %v1151_v62 = vpop.permute.xlu1 %1150  ;;  %v1431_v51 = vsel %vm1419_vm14, %v1394_v58, %v1135_v28  ;;  %v2154_v28 = vld [vmem:[%s2238_s22 + $0x78] sm:$0xff]  }
 0x12f   : > { %v1447_v50 = vsel %vm1419_vm14, %v1410_v56, %v1151_v62  ;;  %1065 = vrot.lane.b32.xlu0 %v1004_v59, %s2187_s7  ;;  %2042 = vmatmul.mubr.msk.bf16.gmra.mrb[8].mxu0 %vm1483_vm15, %v1431_v51 }
 0x130   : > { %1081 = vrot.lane.b32.xlu1 %v1046_v52, %s2187_s7  ;;  %2058 = vmatmul.mubr.msk.bf16.gmra.mrb[4].mxu1 %vm1483_vm15, %v1447_v50 }
 0x131   : > { %v542_v2 = vpop.permute.xlu0 %541 }
 0x132   : > { %v558_v53 = vpop.permute.xlu1 %557  ;;  %v1176_v10 = vsel %vm1160_vm7, %v2153_v25, %v542_v2 }
 0x133   : > { %1140 = vrot.lane.b32.xlu0 %v1105_v24, %s2188_s8  ;;  %v1192_v52 = vsel %vm1160_vm7, %v2154_v28, %v558_v53  ;;  %v2155_v28 = vld [vmem:[%s2238_s22 + $0x40] sm:$0xff]  }
 0x134   : > { %1156 = vrot.lane.b32.xlu1 %v1121_v33, %s2188_s8 }
 0x135   : > { %v617_v37 = vpop.permute.xlu0 %616 }
 0x136   : > { %v633_v39 = vpop.permute.xlu1 %632  ;;  %v1211_v42 = vsel %vm1197_vm8, %v1174_v11, %v617_v37 }
 0x137   : > { %1142 = vrot.lane.b32.xlu0 %v1107_v0, %s2188_s8  ;;  %v1227_v35 = vsel %vm1197_vm8, %v1190_v16, %v633_v39 }
 0x138   : > { %1158 = vrot.lane.b32.xlu1 %v1123_v6, %s2188_s8 }
 0x139   : > { %v619_v36 = vpop.permute.xlu0 %618 }
 0x13a   : > { %v635_v8 = vpop.permute.xlu1 %634  ;;  %v1213_v15 = vsel %vm1197_vm8, %v1176_v10, %v619_v36 }
 0x13b   : > { %v1229_v56 = vsel %vm1197_vm8, %v1192_v52, %v635_v8 }
 0x13d   : > { %v670_v31 = vpop.permute.xlu0 %669 }
 0x13e   : > { %v686_v41 = vpop.permute.xlu1 %685  ;;  %v1248_v38 = vsel %vm1234_vm9, %v1211_v42, %v670_v31 }
 0x13f   : > { %v1264_v20 = vsel %vm1234_vm9, %v1227_v35, %v686_v41 }
 0x141   : > { %v672_v1 = vpop.permute.xlu0 %671 }
 0x142   : > { %v688_v14 = vpop.permute.xlu1 %687  ;;  %v1250_v62 = vsel %vm1234_vm9, %v1213_v15, %v672_v1  ;;  %v2156_v15 = vld [vmem:[%s2238_s22 + $0x80] sm:$0xff]  }
 0x143   : > { %v1266_v50 = vsel %vm1234_vm9, %v1229_v56, %v688_v14 }
 0x145   : > { %v800_v48 = vpop.permute.xlu0 %799 }
 0x146   : > { %v816_v21 = vpop.permute.xlu1 %815  ;;  %v1285_v32 = vsel %vm1271_vm10, %v1248_v38, %v800_v48 }
 0x147   : > { %v1301_v23 = vsel %vm1271_vm10, %v1264_v20, %v816_v21 }
 0x149   : > { %v802_v40 = vpop.permute.xlu0 %801 }
 0x14a   : > { %v818_v61 = vpop.permute.xlu1 %817  ;;  %v1287_v24 = vsel %vm1271_vm10, %v1250_v62, %v802_v40 }
 0x14b   : > { %v1303_v33 = vsel %vm1271_vm10, %v1266_v50, %v818_v61 }
 0x14d   : > { %v877_v12 = vpop.permute.xlu0 %876 }
 0x14e   : > { %v893_v30 = vpop.permute.xlu1 %892  ;;  %v1322_v22 = vsel %vm1308_vm11, %v1285_v32, %v877_v12 }
 0x14f   : > { %v1338_v34 = vsel %vm1308_vm11, %v1301_v23, %v893_v30  ;;  %v3392_v30 = vld [vmem:[%s3610_s2] ss:$0 sm:$0xff] }
 0x151   : > { %v879_v7 = vpop.permute.xlu0 %878 }
 0x152   : > { %v895_v26 = vpop.permute.xlu1 %894  ;;  %v1324_v27 = vsel %vm1308_vm11, %v1287_v24, %v879_v7 }
 0x153   : > { %v1340_v53 = vsel %vm1308_vm11, %v1303_v33, %v895_v26 }
 0x155   : > { %v930_v18 = vpop.permute.xlu0 %929 }
 0x156   : > { %v946_v57 = vpop.permute.xlu1 %945  ;;  %v1359_v47 = vsel %vm1345_vm12, %v1322_v22, %v930_v18  ;;  %v3400_v18 = vld [vmem:[%s3611_s3] ss:$0 sm:$0xff] }
 0x157   : > { %v1375_v54 = vsel %vm1345_vm12, %v1338_v34, %v946_v57 }
 0x159   : > { %v932_v44 = vpop.permute.xlu0 %931 }
 0x15a   : > { %v948_v19 = vpop.permute.xlu1 %947  ;;  %v1361_v4 = vsel %vm1345_vm12, %v1324_v27, %v932_v44 }
 0x15b   : > { %v1377_v55 = vsel %vm1345_vm12, %v1340_v53, %v948_v19 }
 0x15d   : > { %v1060_v63 = vpop.permute.xlu0 %1059 }
 0x15e   : > { %v1076_v46 = vpop.permute.xlu1 %1075  ;;  %v1396_v5 = vsel %vm1382_vm13, %v1359_v47, %v1060_v63 }
 0x15f   : > { %v1412_v9 = vsel %vm1382_vm13, %v1375_v54, %v1076_v46 }
 0x161   : > { %v1062_v45 = vpop.permute.xlu0 %1061 }
 0x162   : > { %v1078_v3 = vpop.permute.xlu1 %1077  ;;  %v1398_v0 = vsel %vm1382_vm13, %v1361_v4, %v1062_v45 }
 0x163   : > { %v1414_v6 = vsel %vm1382_vm13, %v1377_v55, %v1078_v3 }
 0x165   : > { %v1137_v17 = vpop.permute.xlu0 %1136 }
 0x166   : > { %v1153_v59 = vpop.permute.xlu1 %1152  ;;  %v1433_v13 = vsel %vm1419_vm14, %v1396_v5, %v1137_v17 }
 0x167   : > { %v1449_v58 = vsel %vm1419_vm14, %v1412_v9, %v1153_v59  ;;  %2045 = vmatprep.mubr.msk.bf16.mxu0 %vm1483_vm15, %v1433_v13 }
 0x168   : > { %2061 = vmatprep.mubr.msk.bf16.mxu1 %vm1483_vm15, %v1449_v58 }
 0x169   : > { %v3362_v51 = vpop.permute.xlu0 %543 }
 0x16a   : > { %v3366_v2 = vpop.permute.xlu1 %559  ;;  %v1178_v52 = vsel %vm1160_vm7, %v2155_v28, %v3362_v51 }
 0x16b   : > { %v1194_v56 = vsel %vm1160_vm7, %v2156_v15, %v3366_v2 }
 0x16d   : > { %v1139_v37 = vpop.permute.xlu0 %1138 }
 0x16e   : > { %v1155_v39 = vpop.permute.xlu1 %1154  ;;  %v1435_v36 = vsel %vm1419_vm14, %v1398_v0, %v1139_v37 }
 0x16f   : > { %v1451_v8 = vsel %vm1419_vm14, %v1414_v6, %v1155_v39  ;;  %2046 = vmatmul.mubr.msk.bf16.gmra.mrb[12].mxu0 %vm1483_vm15, %v1435_v36 }
 0x170   : > { %2062 = vmatmul.mubr.msk.bf16.gmra.mrb[8].mxu1 %vm1483_vm15, %v1451_v8 }
 0x171   : > { %v3379_v31 = vpop.permute.xlu0 %545 }
 0x172   : > { %v3381_v41 = vpop.permute.xlu1 %561  ;;  %v1180_v51 = vsel %vm1160_vm7, %v2877_v43, %v3379_v31 }
 0x173   : > { %v1196_v0 = vsel %vm1160_vm7, %v2874_v60, %v3381_v41 }
 0x175   : > { %v621_v1 = vpop.permute.xlu0 %620 }
 0x176   : > { %v637_v14 = vpop.permute.xlu1 %636  ;;  %v1215_v62 = vsel %vm1197_vm8, %v1178_v52, %v621_v1 }
 0x177   : > { %v1231_v50 = vsel %vm1197_vm8, %v1194_v56, %v637_v14 }
 0x179   : > { %v3383_v48 = vpop.permute.xlu0 %622 }
 0x17a   : > { %v3385_v21 = vpop.permute.xlu1 %638  ;;  %v1217_v37 = vsel %vm1197_vm8, %v1180_v51, %v3383_v48 }
 0x17b   : > { %v1233_v36 = vsel %vm1197_vm8, %v1196_v0, %v3385_v21 }
 0x17d   : > { %v674_v40 = vpop.permute.xlu0 %673 }
 0x17e   : > { %v690_v61 = vpop.permute.xlu1 %689  ;;  %v1252_v24 = vsel %vm1234_vm9, %v1215_v62, %v674_v40 }
 0x17f   : > { %v1268_v27 = vsel %vm1234_vm9, %v1231_v50, %v690_v61 }
 0x181   : > { %v3387_v12 = vpop.permute.xlu0 %675 }
 0x182   : > { %v3394_v7 = vpop.permute.xlu1 %691  ;;  %v1254_v43 = vsel %vm1234_vm9, %v1217_v37, %v3387_v12 }
 0x183   : > { %v2035_v26 = vpop.f32.mrb[0].mxu0  ;;  %v1270_v60 = vsel %vm1234_vm9, %v1233_v36, %v3394_v7 }
 0x184   : > { %v1567_v57 = vadd.f32 %v2035_v26, %v3392_v30  ;;  %v1558_v44 = vpop.f32.mrb[1].mxu0 }
 0x185   : > { %v1559_v19 = vadd.f32 %v3392_v30, %v1558_v44  ;;  %v2036_v63 = vpop.f32.mrb[2].mxu0  ;;  %v804_v46 = vpop.permute.xlu0 %803 }
 0x186   : > { %vm1703_vm0 = vcmp.ge.f32.partialorder %v1567_v57, 0.0  ;;  %v1746_v49 = vmul.f32 %v3400_v18, %v1567_v57  ;;  %v1570_v11 = vadd.f32 %v2036_v63, %v3392_v30  ;;  %v820_v29 = vpop.permute.xlu1 %819  ;;  %v1561_v16 = vpop.f32.mrb[3].mxu0  ;;  %v1289_v53 = vsel %vm1271_vm10, %v1252_v24, %v804_v46 }
 0x187   : > { %vm1701_vm1 = vcmp.ge.f32.partialorder %v1559_v19, 0.0  ;;  %v1744_v42 = vmul.f32 %v3400_v18, %v1559_v19  ;;  %v1562_v35 = vadd.f32 %v3392_v30, %v1561_v16  ;;  %v1305_v55 = vsel %vm1271_vm10, %v1268_v27, %v820_v29 }
 0x188   : > { %v1782_v38 = vsel %vm1703_vm0, %v1567_v57, %v1746_v49  ;;  %vm1704_vm2 = vcmp.ge.f32.partialorder %v1570_v11, 0.0  ;;  %v1747_v45 = vmul.f32 %v3400_v18, %v1570_v11 }
 0x189   : > { %1818 = vst.msk [vmem:[%s3407_s23 + $0x10] sm:$0xff] %vm1271_vm10, %v1782_v38  ;;  %v1780_v20 = vsel %vm1701_vm1, %v1559_v19, %v1744_v42  ;;  %vm1702_vm3 = vcmp.ge.f32.partialorder %v1562_v35, 0.0  ;;  %v1745_v32 = vmul.f32 %v3400_v18, %v1562_v35  ;;  %v806_v3 = vpop.permute.xlu0 %805 }
 0x18a   : > { %1816 = vst.msk [vmem:[%s3407_s23] sm:$0xff] %vm1271_vm10, %v1780_v20  ;;  %v1783_v23 = vsel %vm1704_vm2, %v1570_v11, %v1747_v45  ;;  %v822_v22 = vpop.permute.xlu1 %821  ;;  %v1291_v41 = vsel %vm1271_vm10, %v1254_v43, %v806_v3 }
 0x18b   : > { %1819 = vst.msk [vmem:[%s3407_s23 + $0x18] sm:$0xff] %vm1271_vm10, %v1783_v23  ;;  %v1781_v34 = vsel %vm1702_vm3, %v1562_v35, %v1745_v32  ;;  %v1307_v21 = vsel %vm1271_vm10, %v1270_v60, %v822_v22 }
 0x18c   : > { %1817 = vst.msk [vmem:[%s3407_s23 + $0x8] sm:$0xff] %vm1271_vm10, %v1781_v34 }
 0x18d   : > { %v881_v47 = vpop.permute.xlu0 %880 }
 0x18e   : > { %v897_v54 = vpop.permute.xlu1 %896  ;;  %v1326_v2 = vsel %vm1308_vm11, %v1289_v53, %v881_v47 }
 0x18f   : > { %v1342_v6 = vsel %vm1308_vm11, %v1305_v55, %v897_v54 }
 0x191   : > { %v883_v5 = vpop.permute.xlu0 %882 }
 0x192   : > { %v899_v17 = vpop.permute.xlu1 %898  ;;  %v1328_v61 = vsel %vm1308_vm11, %v1291_v41, %v883_v5 }
 0x193   : > { %v1344_v26 = vsel %vm1308_vm11, %v1307_v21, %v899_v17 }
 0x195   : > { %v934_v9 = vpop.permute.xlu0 %933 }
 0x196   : > { %v950_v59 = vpop.permute.xlu1 %949  ;;  %v1363_v39 = vsel %vm1345_vm12, %v1326_v2, %v934_v9 }
 0x197   : > { %v1379_v8 = vsel %vm1345_vm12, %v1342_v6, %v950_v59 }
 0x199   : > { %v936_v13 = vpop.permute.xlu0 %935 }
 0x19a   : > { %v952_v25 = vpop.permute.xlu1 %951  ;;  %v1365_v57 = vsel %vm1345_vm12, %v1328_v61, %v936_v13 }
 0x19b   : > { %v1381_v7 = vsel %vm1345_vm12, %v1344_v26, %v952_v25 }
 0x19d   : > { %v1064_v10 = vpop.permute.xlu0 %1063 }
 0x19e   : > { %v1080_v58 = vpop.permute.xlu1 %1079  ;;  %v1400_v31 = vsel %vm1382_vm13, %v1363_v39, %v1064_v10 }
 0x19f   : > { %v1416_v14 = vsel %vm1382_vm13, %v1379_v8, %v1080_v58 }
 0x1a1   : > { %v1066_v33 = vpop.permute.xlu0 %1065 }
 0x1a2   : > { %v1082_v4 = vpop.permute.xlu1 %1081  ;;  %v1402_v44 = vsel %vm1382_vm13, %v1365_v57, %v1066_v33 }
 0x1a3   : > { %v1418_v63 = vsel %vm1382_vm13, %v1381_v7, %v1082_v4 }
 0x1a5   : > { %v1141_v1 = vpop.permute.xlu0 %1140 }
 0x1a6   : > { %v1157_v48 = vpop.permute.xlu1 %1156  ;;  %v1437_v40 = vsel %vm1419_vm14, %v1400_v31, %v1141_v1 }
 0x1a7   : > { %v1453_v12 = vsel %vm1419_vm14, %v1416_v14, %v1157_v48  ;;  %2049 = vmatprep.mubr.msk.bf16.mxu0 %vm1483_vm15, %v1437_v40 }
 0x1a8   : > { %2065 = vmatprep.mubr.msk.bf16.mxu1 %vm1483_vm15, %v1453_v12 }
 0x1a9   : > { %v1143_v19 = vpop.permute.xlu0 %1142 }
 0x1aa   : > { %v1159_v46 = vpop.permute.xlu1 %1158  ;;  %v1439_v49 = vsel %vm1419_vm14, %v1402_v44, %v1143_v19 }
 0x1ab   : > { %v1455_v11 = vsel %vm1419_vm14, %v1418_v63, %v1159_v46  ;;  %2050 = vmatmul.mubr.msk.bf16.gmra.mrb[16].mxu0 %vm1483_vm15, %v1439_v49 }
 0x1ac   : > { %2066 = vmatmul.mubr.msk.bf16.gmra.mrb[12].mxu1 %vm1483_vm15, %v1455_v11 }
 0x1c2   : > { %v2039_v29 = vpop.f32.mrb[4].mxu0 }
 0x1c3   : > { %v1583_v16 = vadd.f32 %v2039_v29, %v3392_v30  ;;  %v2055_v42 = vpop.f32.mrb[0].mxu1  ;;  %v1574_v35 = vpop.f32.mrb[5].mxu0 }
 0x1c4   : > { %v1647_v38 = vadd.f32 %v2055_v42, %v3392_v30  ;;  %v1575_v45 = vadd.f32 %v3392_v30, %v1574_v35  ;;  %v1638_v20 = vpop.f32.mrb[1].mxu1  ;;  %v2040_v32 = vpop.f32.mrb[6].mxu0 }
 0x1c5   : > { %vm1707_vm4 = vcmp.ge.f32.partialorder %v1583_v16, 0.0  ;;  %v1750_v3 = vmul.f32 %v3400_v18, %v1583_v16  ;;  %v1639_v23 = vadd.f32 %v3392_v30, %v1638_v20  ;;  %v1586_v22 = vadd.f32 %v2040_v32, %v3392_v30  ;;  %v2056_v34 = vpop.f32.mrb[2].mxu1  ;;  %v1577_v47 = vpop.f32.mrb[7].mxu0 }
 0x1c6   : > { %vm1723_vm5 = vcmp.ge.f32.partialorder %v1647_v38, 0.0  ;;  %v1766_v54 = vmul.f32 %v3400_v18, %v1647_v38  ;;  %vm1705_vm6 = vcmp.ge.f32.partialorder %v1575_v45, 0.0  ;;  %v1748_v5 = vmul.f32 %v3400_v18, %v1575_v45  ;;  %v1641_v17 = vpop.f32.mrb[3].mxu1 }
 0x1c7   : > { %v1786_v9 = vsel %vm1707_vm4, %v1583_v16, %v1750_v3  ;;  %vm1721_vm7 = vcmp.ge.f32.partialorder %v1639_v23, 0.0  ;;  %v1764_v59 = vmul.f32 %v3400_v18, %v1639_v23  ;;  %vm1708_vm8 = vcmp.ge.f32.partialorder %v1586_v22, 0.0 }
 0x1c8   : > { %1822 = vst.msk [vmem:[%s3407_s23 + $0x30] sm:$0xff] %vm1271_vm10, %v1786_v9  ;;  %v1802_v13 = vsel %vm1723_vm5, %v1647_v38, %v1766_v54  ;;  %v1784_v25 = vsel %vm1705_vm6, %v1575_v45, %v1748_v5  ;;  %v1751_v10 = vmul.f32 %v3400_v18, %v1586_v22  ;;  %v1650_v58 = vadd.f32 %v2056_v34, %v3392_v30 }
 0x1c9   : > { %1838 = vst.msk [vmem:[%s3407_s23 + $0xb0] sm:$0xff] %vm1271_vm10, %v1802_v13  ;;  %1820 = vst.msk [vmem:[%s3407_s23 + $0x20] sm:$0xff] %vm1271_vm10, %v1784_v25  ;;  %v1800_v28 = vsel %vm1721_vm7, %v1639_v23, %v1764_v59  ;;  %v1578_v52 = vadd.f32 %v3392_v30, %v1577_v47  ;;  %v1642_v15 = vadd.f32 %v3392_v30, %v1641_v17 }
 0x1ca   : > { %1836 = vst.msk [vmem:[%s3407_s23 + $0xa0] sm:$0xff] %vm1271_vm10, %v1800_v28  ;;  %v1787_v56 = vsel %vm1708_vm8, %v1586_v22, %v1751_v10  ;;  %vm1724_vm9 = vcmp.ge.f32.partialorder %v1650_v58, 0.0  ;;  %v1767_v62 = vmul.f32 %v3400_v18, %v1650_v58 }
 0x1cb   : > { %1823 = vst.msk [vmem:[%s3407_s23 + $0x38] sm:$0xff] %vm1271_vm10, %v1787_v56  ;;  %vm1706_vm11 = vcmp.ge.f32.partialorder %v1578_v52, 0.0  ;;  %v1749_v50 = vmul.f32 %v3400_v18, %v1578_v52  ;;  %vm1722_vm12 = vcmp.ge.f32.partialorder %v1642_v15, 0.0  ;;  %v1765_v24 = vmul.f32 %v3400_v18, %v1642_v15 }
 0x1cc   : > { %v1803_v33 = vsel %vm1724_vm9, %v1650_v58, %v1767_v62 }
 0x1cd   : > { %1839 = vst.msk [vmem:[%s3407_s23 + $0xb8] sm:$0xff] %vm1271_vm10, %v1803_v33  ;;  %v1785_v27 = vsel %vm1706_vm11, %v1578_v52, %v1749_v50  ;;  %v1801_v53 = vsel %vm1722_vm12, %v1642_v15, %v1765_v24 }
 0x1ce   : > { %1821 = vst.msk [vmem:[%s3407_s23 + $0x28] sm:$0xff] %vm1271_vm10, %v1785_v27  ;;  %1837 = vst.msk [vmem:[%s3407_s23 + $0xa8] sm:$0xff] %vm1271_vm10, %v1801_v53 }
 0x202   : > { %v2043_v4 = vpop.f32.mrb[8].mxu0 }
 0x203   : > { %v1599_v51 = vadd.f32 %v2043_v4, %v3392_v30  ;;  %v2059_v55 = vpop.f32.mrb[4].mxu1  ;;  %v1590_v2 = vpop.f32.mrb[9].mxu0 }
 0x204   : > { %v1663_v0 = vadd.f32 %v2059_v55, %v3392_v30  ;;  %v1591_v37 = vadd.f32 %v3392_v30, %v1590_v2  ;;  %v1654_v6 = vpop.f32.mrb[5].mxu1  ;;  %v2044_v39 = vpop.f32.mrb[10].mxu0 }
 0x205   : > { %vm1711_vm13 = vcmp.ge.f32.partialorder %v1599_v51, 0.0  ;;  %v1754_v36 = vmul.f32 %v3400_v18, %v1599_v51  ;;  %v1655_v43 = vadd.f32 %v3392_v30, %v1654_v6  ;;  %v1602_v8 = vadd.f32 %v2044_v39, %v3392_v30  ;;  %v2060_v31 = vpop.f32.mrb[6].mxu1  ;;  %v1593_v1 = vpop.f32.mrb[11].mxu0 }
 0x206   : > { %vm1727_vm14 = vcmp.ge.f32.partialorder %v1663_v0, 0.0  ;;  %v1770_v60 = vmul.f32 %v3400_v18, %v1663_v0  ;;  %vm1709_vm15 = vcmp.ge.f32.partialorder %v1591_v37, 0.0  ;;  %v1752_v41 = vmul.f32 %v3400_v18, %v1591_v37  ;;  %v1657_v14 = vpop.f32.mrb[7].mxu1 }
 0x207   : > { %v1790_v48 = vsel %vm1711_vm13, %v1599_v51, %v1754_v36  ;;  %vm1725_vm0 = vcmp.ge.f32.partialorder %v1655_v43, 0.0  ;;  %v1768_v40 = vmul.f32 %v3400_v18, %v1655_v43  ;;  %vm1712_vm1 = vcmp.ge.f32.partialorder %v1602_v8, 0.0 }
 0x208   : > { %1826 = vst.msk [vmem:[%s3407_s23 + $0x50] sm:$0xff] %vm1271_vm10, %v1790_v48  ;;  %v1806_v21 = vsel %vm1727_vm14, %v1663_v0, %v1770_v60  ;;  %v1788_v61 = vsel %vm1709_vm15, %v1591_v37, %v1752_v41  ;;  %v1755_v12 = vmul.f32 %v3400_v18, %v1602_v8  ;;  %v1666_v26 = vadd.f32 %v2060_v31, %v3392_v30 }
 0x209   : > { %1842 = vst.msk [vmem:[%s3407_s23 + $0xd0] sm:$0xff] %vm1271_vm10, %v1806_v21  ;;  %1824 = vst.msk [vmem:[%s3407_s23 + $0x40] sm:$0xff] %vm1271_vm10, %v1788_v61  ;;  %v1804_v57 = vsel %vm1725_vm0, %v1655_v43, %v1768_v40  ;;  %v1594_v7 = vadd.f32 %v3392_v30, %v1593_v1  ;;  %v1658_v44 = vadd.f32 %v3392_v30, %v1657_v14 }
 0x20a   : > { %1840 = vst.msk [vmem:[%s3407_s23 + $0xc0] sm:$0xff] %vm1271_vm10, %v1804_v57  ;;  %v1791_v19 = vsel %vm1712_vm1, %v1602_v8, %v1755_v12  ;;  %vm1728_vm2 = vcmp.ge.f32.partialorder %v1666_v26, 0.0  ;;  %v1771_v63 = vmul.f32 %v3400_v18, %v1666_v26 }
 0x20b   : > { %1827 = vst.msk [vmem:[%s3407_s23 + $0x58] sm:$0xff] %vm1271_vm10, %v1791_v19  ;;  %vm1710_vm3 = vcmp.ge.f32.partialorder %v1594_v7, 0.0  ;;  %v1753_v46 = vmul.f32 %v3400_v18, %v1594_v7  ;;  %vm1726_vm4 = vcmp.ge.f32.partialorder %v1658_v44, 0.0  ;;  %v1769_v49 = vmul.f32 %v3400_v18, %v1658_v44 }
 0x20c   : > { %v1807_v11 = vsel %vm1728_vm2, %v1666_v26, %v1771_v63 }
 0x20d   : > { %1843 = vst.msk [vmem:[%s3407_s23 + $0xd8] sm:$0xff] %vm1271_vm10, %v1807_v11  ;;  %v1789_v29 = vsel %vm1710_vm3, %v1594_v7, %v1753_v46  ;;  %v1805_v16 = vsel %vm1726_vm4, %v1658_v44, %v1769_v49 }
 0x20e   : > { %1825 = vst.msk [vmem:[%s3407_s23 + $0x48] sm:$0xff] %vm1271_vm10, %v1789_v29  ;;  %1841 = vst.msk [vmem:[%s3407_s23 + $0xc8] sm:$0xff] %vm1271_vm10, %v1805_v16 }
 0x242   : > { %v2047_v42 = vpop.f32.mrb[12].mxu0 }
 0x243   : > { %v1615_v35 = vadd.f32 %v2047_v42, %v3392_v30  ;;  %v2063_v38 = vpop.f32.mrb[8].mxu1  ;;  %v1606_v45 = vpop.f32.mrb[13].mxu0 }
 0x244   : > { %v1679_v20 = vadd.f32 %v2063_v38, %v3392_v30  ;;  %v1607_v32 = vadd.f32 %v3392_v30, %v1606_v45  ;;  %v1670_v3 = vpop.f32.mrb[9].mxu1  ;;  %v2048_v23 = vpop.f32.mrb[14].mxu0 }
 0x245   : > { %vm1715_vm5 = vcmp.ge.f32.partialorder %v1615_v35, 0.0  ;;  %v1758_v22 = vmul.f32 %v3400_v18, %v1615_v35  ;;  %v1671_v34 = vadd.f32 %v3392_v30, %v1670_v3  ;;  %v1618_v47 = vadd.f32 %v2048_v23, %v3392_v30  ;;  %v2064_v54 = vpop.f32.mrb[10].mxu1  ;;  %v1609_v5 = vpop.f32.mrb[15].mxu0 }
 0x246   : > { %vm1731_vm6 = vcmp.ge.f32.partialorder %v1679_v20, 0.0  ;;  %v1774_v17 = vmul.f32 %v3400_v18, %v1679_v20  ;;  %vm1713_vm7 = vcmp.ge.f32.partialorder %v1607_v32, 0.0  ;;  %v1756_v9 = vmul.f32 %v3400_v18, %v1607_v32  ;;  %v1673_v59 = vpop.f32.mrb[11].mxu1 }
 0x247   : > { %v1794_v13 = vsel %vm1715_vm5, %v1615_v35, %v1758_v22  ;;  %vm1729_vm8 = vcmp.ge.f32.partialorder %v1671_v34, 0.0  ;;  %v1772_v25 = vmul.f32 %v3400_v18, %v1671_v34  ;;  %vm1716_vm9 = vcmp.ge.f32.partialorder %v1618_v47, 0.0 }
 0x248   : > { %1830 = vst.msk [vmem:[%s3407_s23 + $0x70] sm:$0xff] %vm1271_vm10, %v1794_v13  ;;  %v1810_v10 = vsel %vm1731_vm6, %v1679_v20, %v1774_v17  ;;  %v1792_v58 = vsel %vm1713_vm7, %v1607_v32, %v1756_v9  ;;  %v1759_v28 = vmul.f32 %v3400_v18, %v1618_v47  ;;  %v1682_v52 = vadd.f32 %v2064_v54, %v3392_v30 }
 0x249   : > { %1846 = vst.msk [vmem:[%s3407_s23 + $0xf0] sm:$0xff] %vm1271_vm10, %v1810_v10  ;;  %1828 = vst.msk [vmem:[%s3407_s23 + $0x60] sm:$0xff] %vm1271_vm10, %v1792_v58  ;;  %v1808_v15 = vsel %vm1729_vm8, %v1671_v34, %v1772_v25  ;;  %v1610_v56 = vadd.f32 %v3392_v30, %v1609_v5  ;;  %v1674_v62 = vadd.f32 %v3392_v30, %v1673_v59 }
 0x24a   : > { %1844 = vst.msk [vmem:[%s3407_s23 + $0xe0] sm:$0xff] %vm1271_vm10, %v1808_v15  ;;  %v1795_v50 = vsel %vm1716_vm9, %v1618_v47, %v1759_v28  ;;  %vm1732_vm11 = vcmp.ge.f32.partialorder %v1682_v52, 0.0  ;;  %v1775_v24 = vmul.f32 %v3400_v18, %v1682_v52 }
 0x24b   : > { %1831 = vst.msk [vmem:[%s3407_s23 + $0x78] sm:$0xff] %vm1271_vm10, %v1795_v50  ;;  %vm1714_vm12 = vcmp.ge.f32.partialorder %v1610_v56, 0.0  ;;  %v1757_v33 = vmul.f32 %v3400_v18, %v1610_v56  ;;  %vm1730_vm13 = vcmp.ge.f32.partialorder %v1674_v62, 0.0  ;;  %v1773_v27 = vmul.f32 %v3400_v18, %v1674_v62 }
 0x24c   : > { %v1811_v53 = vsel %vm1732_vm11, %v1682_v52, %v1775_v24 }
 0x24d   : > { %1847 = vst.msk [vmem:[%s3407_s23 + $0xf8] sm:$0xff] %vm1271_vm10, %v1811_v53  ;;  %v1793_v4 = vsel %vm1714_vm12, %v1610_v56, %v1757_v33  ;;  %v1809_v51 = vsel %vm1730_vm13, %v1674_v62, %v1773_v27 }
 0x24e   : > { %1829 = vst.msk [vmem:[%s3407_s23 + $0x68] sm:$0xff] %vm1271_vm10, %v1793_v4  ;;  %1845 = vst.msk [vmem:[%s3407_s23 + $0xe8] sm:$0xff] %vm1271_vm10, %v1809_v51 }
 0x27e   : > { %v2051_v55 = vpop.f32.mrb[16].mxu0 }
 0x27f   : > { %v1631_v2 = vadd.f32 %v2051_v55, %v3392_v30  ;;  %v2067_v0 = vpop.f32.mrb[12].mxu1  ;;  %v1622_v37 = vpop.f32.mrb[17].mxu0 }
 0x280   : > { %v1695_v6 = vadd.f32 %v2067_v0, %v3392_v30  ;;  %v1623_v39 = vadd.f32 %v3392_v30, %v1622_v37  ;;  %v1686_v36 = vpop.f32.mrb[13].mxu1  ;;  %v2052_v43 = vpop.f32.mrb[18].mxu0 }
 0x281   : > { %vm1719_vm14 = vcmp.ge.f32.partialorder %v1631_v2, 0.0  ;;  %v1762_v8 = vmul.f32 %v3400_v18, %v1631_v2  ;;  %v1687_v31 = vadd.f32 %v3392_v30, %v1686_v36  ;;  %v1634_v1 = vadd.f32 %v2052_v43, %v3392_v30  ;;  %v2068_v60 = vpop.f32.mrb[14].mxu1  ;;  %v1625_v41 = vpop.f32.mrb[19].mxu0 }
 0x282   : > { %vm1735_vm15 = vcmp.ge.f32.partialorder %v1695_v6, 0.0  ;;  %v1778_v14 = vmul.f32 %v3400_v18, %v1695_v6  ;;  %vm1717_vm0 = vcmp.ge.f32.partialorder %v1623_v39, 0.0  ;;  %v1760_v48 = vmul.f32 %v3400_v18, %v1623_v39  ;;  %v1689_v40 = vpop.f32.mrb[15].mxu1 }
 0x283   : > { %v1798_v21 = vsel %vm1719_vm14, %v1631_v2, %v1762_v8  ;;  %vm1733_vm1 = vcmp.ge.f32.partialorder %v1687_v31, 0.0  ;;  %v1776_v61 = vmul.f32 %v3400_v18, %v1687_v31  ;;  %vm1720_vm2 = vcmp.ge.f32.partialorder %v1634_v1, 0.0 }
 0x284   : > { %1834 = vst.msk [vmem:[%s3407_s23 + $0x90] sm:$0xff] %vm1271_vm10, %v1798_v21  ;;  %v1814_v12 = vsel %vm1735_vm15, %v1695_v6, %v1778_v14  ;;  %v1796_v26 = vsel %vm1717_vm0, %v1623_v39, %v1760_v48  ;;  %v1763_v57 = vmul.f32 %v3400_v18, %v1634_v1  ;;  %v1698_v7 = vadd.f32 %v2068_v60, %v3392_v30 }
 0x285   : > { %1850 = vst.msk [vmem:[%s3407_s23 + $0x110] sm:$0xff] %vm1271_vm10, %v1814_v12  ;;  %1832 = vst.msk [vmem:[%s3407_s23 + $0x80] sm:$0xff] %vm1271_vm10, %v1796_v26  ;;  %v1812_v44 = vsel %vm1733_vm1, %v1687_v31, %v1776_v61  ;;  %v1626_v19 = vadd.f32 %v3392_v30, %v1625_v41  ;;  %v1690_v63 = vadd.f32 %v3392_v30, %v1689_v40 }
 0x286   : > { %1848 = vst.msk [vmem:[%s3407_s23 + $0x100] sm:$0xff] %vm1271_vm10, %v1812_v44  ;;  %v1799_v46 = vsel %vm1720_vm2, %v1634_v1, %v1763_v57  ;;  %vm1736_vm3 = vcmp.ge.f32.partialorder %v1698_v7, 0.0  ;;  %v1779_v49 = vmul.f32 %v3400_v18, %v1698_v7 }
 0x287   : > { %1835 = vst.msk [vmem:[%s3407_s23 + $0x98] sm:$0xff] %vm1271_vm10, %v1799_v46  ;;  %vm1718_vm4 = vcmp.ge.f32.partialorder %v1626_v19, 0.0  ;;  %v1761_v11 = vmul.f32 %v3400_v18, %v1626_v19  ;;  %vm1734_vm5 = vcmp.ge.f32.partialorder %v1690_v63, 0.0  ;;  %v1777_v29 = vmul.f32 %v3400_v18, %v1690_v63 }
 0x288   : > { %v1815_v16 = vsel %vm1736_vm3, %v1698_v7, %v1779_v49 }
 0x289   : > { %1851 = vst.msk [vmem:[%s3407_s23 + $0x118] sm:$0xff] %vm1271_vm10, %v1815_v16  ;;  %v1797_v42 = vsel %vm1718_vm4, %v1626_v19, %v1761_v11  ;;  %v1813_v35 = vsel %vm1734_vm5, %v1690_v63, %v1777_v29 }
 0x28a   : > { %1833 = vst.msk [vmem:[%s3407_s23 + $0x88] sm:$0xff] %vm1271_vm10, %v1797_v42  ;;  %1849 = vst.msk [vmem:[%s3407_s23 + $0x108] sm:$0xff] %vm1271_vm10, %v1813_v35 }
 0x28b PF: > { %s14_s17 = sadd.s32 1, %s2179_s17   ;;  %s3680_s15 = smov %s2175_s16 }
 0x28c   : > { %p11_p5 = scmp.ge.s32.totalorder %s14_s17, 4   ;;  %s3681_s16 = smov %s3683_s18 }
 0x28e   :  { %13 = sbr.rel (!%p11_p5) target bundleno = 2 (0x2), region = 66 }

</bundles_post_ra>
